<compile_context>
chip_gen: v5e
topology: v5e:2x2
jax: 0.10.0
libtpu: 0.0.40
codegen_flags: <defaults>
</compile_context>

<pallas_src>
import functools

import jax
import jax.numpy as jnp
from jax import lax
from jax.experimental import pallas as pl
from jax.experimental.pallas import tpu as pltpu

BN_EPS = 1e-5
_TILE_VMEM_BUDGET = 24 * 1024 * 1024   # working-set budget used to auto-size tiles


def _round_up(x, m):
    return ((x + m - 1) // m) * m


def _device_is_v5():
    try:
        return "v5" in jax.devices()[0].device_kind.lower()
    except Exception:  # pragma: no cover
        return False


_IS_V5 = _device_is_v5()


def _pick_pack(c_out, k):
    """Rows packed per 128-lane output row (lane-dense packing factor)."""
    if c_out > 128 or 128 % c_out != 0:
        return 1
    pack = 128 // c_out
    if not _IS_V5:
        # Enlarge pack until k_pack is a clean multiple of 128 lanes too (unmasked vld, clean
        # MXU K).  Skipped on v5: the kron trick inflates MXU FLOPs by `pack` and v5's MXU is
        # the weakest -- keep it HBM-bound there.
        p = pack
        while (p * k) % 128 != 0 and p * c_out < 512:
            p *= 2
        if (p * k) % 128 == 0:
            pack = p
    return pack


# --------------------------------------------------------------------------- pass 1 kernel
def _conv_stats_kernel(p_ref, w_ref, y_ref, stats_ref):
    # p_ref:     (tile, pack*K)   bf16  -- `pack` im2col rows packed per 128-lane row
    # w_ref:     (pack*K, pack*C) bf16  -- block-diagonal kron(I_pack, W)
    # y_ref:     (tile, pack*C)   bf16  -- packed conv output (lane dense)
    # stats_ref: (1, 2, pack*C)   f32   -- per-tile [sum(y); sum(y*y)]
    y = jnp.dot(p_ref[...], w_ref[...], preferred_element_type=jnp.float32)
    y_ref[...] = y.astype(y_ref.dtype)
    stats_ref[...] = jnp.concatenate(
        [jnp.sum(y, axis=0, keepdims=True),
         jnp.sum(y * y, axis=0, keepdims=True)], axis=0)[None]


# --------------------------------------------------------------------------- pass 2 kernel
def _bn_swish_kernel(y_ref, scale_ref, shift_ref, o_ref):
    # Affine + swish in f32; single transcendental: swish(z) = 0.5*z*(1+tanh(z/2)).
    z = y_ref[...].astype(jnp.float32) * scale_ref[...] + shift_ref[...]
    o_ref[...] = (0.5 * z * (1.0 + jnp.tanh(0.5 * z))).astype(o_ref.dtype)


# --------------------------------------------------------------------------- glue
def _im2col_nhwc(x_nhwc, kh, kw, stride, padding, dilation):
    """x_nhwc: (N, H, W, C) -> patches (N, H_out, W_out, KH*KW*C), flat order (kh, kw, c)."""
    n, h, w, c = x_nhwc.shape
    xp = jnp.pad(x_nhwc, ((0, 0), (padding, padding), (padding, padding), (0, 0)))
    h_out = (h + 2 * padding - dilation * (kh - 1) - 1) // stride + 1
    w_out = (w + 2 * padding - dilation * (kw - 1) - 1) // stride + 1
    cols = []
    for i in range(kh):
        for j in range(kw):
            sl = xp[:,
                    i * dilation: i * dilation + (h_out - 1) * stride + 1: stride,
                    j * dilation: j * dilation + (w_out - 1) * stride + 1: stride,
                    :]
            cols.append(sl)                       # each (N, H_out, W_out, C)
    patches = jnp.concatenate(cols, axis=-1)      # (N, H_out, W_out, KH*KW*C)
    return patches, h_out, w_out


@functools.partial(jax.jit, static_argnames=("stride", "padding", "dilation", "block_rows"))
def conv_bn_swish(x_nchw, weight, bias, gamma, beta, *, stride=1, padding=1, dilation=1,
                  block_rows=None):
    """ConvBNSwish forward.  x_nchw: (N, C_in, H, W); weight: (C_out, C_in, KH, KW).

    `bias` is accepted for API parity but unused: with batch-stats (training-mode) BN the
    per-channel conv bias cancels exactly in (y - mean).  This would be wrong for eval-mode
    (running-stats) BN.
    """
    del bias
    n, c_in, h, w = x_nchw.shape
    c_out, _, kh, kw = weight.shape
    k = kh * kw * c_in

    pack = _pick_pack(c_out, k)
    c_pack = pack * c_out
    k_pack = pack * k

    # ---- layout glue (plain JAX): bf16 BEFORE im2col so the 9x expansion moves half the bytes
    x_nhwc = jnp.transpose(x_nchw.astype(jnp.bfloat16), (0, 2, 3, 1))
    patches, h_out, w_out = _im2col_nhwc(x_nhwc, kh, kw, stride, padding, dilation)
    m = n * h_out * w_out
    patches2d = patches.reshape(m, k)

    # ---- pass-1 tile sizing (bigger tiles amortize ~0.35us/step; keep grid >= 2 for megacore)
    per_row1 = 2 * (k_pack + c_pack) * 2               # bf16 in + bf16 out, double buffered
    m16 = -(-m // pack)                                # packed rows before padding
    m16_c = _round_up(m16, 16)
    tile_cap = min(2048, max(16, _TILE_VMEM_BUDGET // per_row1))
    if block_rows is not None:
        tile_cap = min(tile_cap, max(16, block_rows // pack))
    if m16_c >= 32:
        tile_cap = min(tile_cap, _round_up(m16_c // 2, 16))   # ensure >= 2 grid steps
    tile1 = min(max(16, (tile_cap // 16) * 16), m16_c)
    m16_pad = _round_up(m16, tile1)
    grid1 = m16_pad // tile1

    # pad rows with zeros: with the bias dropped, zero rows contribute nothing to the BN
    # sufficient statistics, and the padded outputs are sliced away below.
    pad_rows = m16_pad * pack - m
    patches_packed = jnp.pad(patches2d, ((0, pad_rows), (0, 0))).reshape(m16_pad, k_pack)

    # block-diagonal weight kron(I_pack, W), built directly in bf16 (matmul emits packed rows,
    # so the kernel never performs a lane reshape).
    w2d = jnp.transpose(weight, (2, 3, 1, 0)).reshape(k, c_out).astype(jnp.bfloat16)
    w_bd = jnp.kron(jnp.eye(pack, dtype=jnp.bfloat16), w2d)

    # ---- pass-2 tile: decoupled from pass 1 (blocks are much smaller per row)
    per_row2 = 2 * (c_pack * 2 + c_pack * 2)           # bf16 in + bf16 out, double buffered
    g = 1
    for cand in range(2, 9):
        if (grid1 % cand == 0 and grid1 // cand >= 2
                and tile1 * cand * per_row2 <= _TILE_VMEM_BUDGET):
            g = cand
    tile2 = tile1 * g
    grid2 = grid1 // g

    # ---- generation-agnostic VMEM limit derived from the actual footprint (+50% headroom)
    vmem_p1 = (2 * tile1 * (k_pack + c_pack) * 2       # patch + y blocks, double buffered
               + 2 * k_pack * c_pack * 2               # resident weight
               + 2 * 2 * c_pack * 4)                   # stats blocks
    vmem_p2 = 2 * tile2 * 2 * c_pack * 2 + 2 * 2 * c_pack * 4
    vmem_limit = int(min(max(int(1.5 * max(vmem_p1, vmem_p2)), 16 * 1024 * 1024),
                         48 * 1024 * 1024))
    cparams = pltpu.CompilerParams(dimension_semantics=("parallel",),
                                   vmem_limit_bytes=vmem_limit)

    ce1 = pl.CostEstimate(
        flops=2 * m16_pad * k_pack * c_pack,
        transcendentals=0,
        bytes_accessed=(m16_pad * k_pack * 2 + k_pack * c_pack * 2
                        + m16_pad * c_pack * 2 + grid1 * 2 * c_pack * 4))
    ce2 = pl.CostEstimate(
        flops=6 * m16_pad * c_pack,
        transcendentals=m16_pad * c_pack,
        bytes_accessed=2 * m16_pad * c_pack * 2 + 2 * c_pack * 4)

    # ---- pass 1: conv matmul (bf16 MXU, f32 acc) + per-tile BN sufficient statistics
    y_packed, stats = pl.pallas_call(
        _conv_stats_kernel,
        out_shape=(jax.ShapeDtypeStruct((m16_pad, c_pack), jnp.bfloat16),
                   jax.ShapeDtypeStruct((grid1, 2, c_pack), jnp.float32)),
        grid=(grid1,),
        in_specs=[pl.BlockSpec((tile1, k_pack), lambda i: (i, 0)),
                  pl.BlockSpec((k_pack, c_pack), lambda i: (0, 0))],
        out_specs=(pl.BlockSpec((tile1, c_pack), lambda i: (i, 0)),
                   pl.BlockSpec((1, 2, c_pack), lambda i: (i, 0, 0))),
        compiler_params=cparams,
        cost_estimate=ce1,
    )(patches_packed, w_bd)

    # ---- O(C) stats reduction + BN affine folding (plain JAX, negligible)
    # NOTE: E[y^2]-E[y]^2 in f32 can cancel for huge M with |mean| >> std; fine at this scale.
    sums = jnp.sum(stats, axis=0)                              # (2, c_pack)
    sum_pc = sums[0].reshape(pack, c_out).sum(axis=0)
    sq_pc = sums[1].reshape(pack, c_out).sum(axis=0)
    inv_cnt = 1.0 / float(m)
    mean = sum_pc * inv_cnt
    var = jnp.maximum(sq_pc * inv_cnt - mean * mean, 0.0)      # biased (training-mode) variance
    scale = gamma.astype(jnp.float32) * lax.rsqrt(var + BN_EPS)
    shift = beta.astype(jnp.float32) - mean * scale
    scale_p = jnp.tile(scale, pack).reshape(1, c_pack)
    shift_p = jnp.tile(shift, pack).reshape(1, c_pack)

    # ---- pass 2: BN affine + swish, streaming the packed bf16 y tiles; output aliases input
    out_packed = pl.pallas_call(
        _bn_swish_kernel,
        out_shape=jax.ShapeDtypeStruct((m16_pad, c_pack), jnp.bfloat16),
        grid=(grid2,),
        in_specs=[pl.BlockSpec((tile2, c_pack), lambda i: (i, 0)),
                  pl.BlockSpec((1, c_pack), lambda i: (0, 0)),
                  pl.BlockSpec((1, c_pack), lambda i: (0, 0))],
        out_specs=pl.BlockSpec((tile2, c_pack), lambda i: (i, 0)),
        compiler_params=cparams,
        cost_estimate=ce2,
        input_output_aliases={0: 0},
    )(y_packed, scale_p, shift_p)

    # undo the row packing (free, row-major), return NCHW f32 (cast fused with the transpose)
    out2d = out_packed.reshape(m16_pad * pack, c_out)[:m]
    out_nhwc = out2d.reshape(n, h_out, w_out, c_out)
    return jnp.transpose(out_nhwc, (0, 3, 1, 2)).astype(jnp.float32)


# --------------------------------------------------------------------------- reference (plain JAX)
def conv_bn_swish_ref(x_nchw, weight, bias, gamma, beta, *, stride=1, padding=1, dilation=1):
    y = lax.conv_general_dilated(
        x_nchw.astype(jnp.float32), weight.astype(jnp.float32),
        window_strides=(stride, stride),
        padding=((padding, padding), (padding, padding)),
        rhs_dilation=(dilation, dilation),
        dimension_numbers=("NCHW", "OIHW", "NCHW"))
    y = y + bias.reshape(1, -1, 1, 1)
    mean = jnp.mean(y, axis=(0, 2, 3), keepdims=True)
    var = jnp.mean((y - mean) ** 2, axis=(0, 2, 3), keepdims=True)
    z = (y - mean) / jnp.sqrt(var + BN_EPS)
    z = z * gamma.reshape(1, -1, 1, 1) + beta.reshape(1, -1, 1, 1)
    return z * jax.nn.sigmoid(z)


# --------------------------------------------------------------------------- main
if __name__ == "__main__":
    # ConvBNSwish(inp=4, oup=8, kernel_size=3) -> stride=1, padding=1, dilation=1, groups=1
    N, C_IN, H, W = 2, 4, 16, 16
    C_OUT, KH, KW = 8, 3, 3

    key = jax.random.PRNGKey(0)
    kx, kw_, kb, kg, kbe = jax.random.split(key, 5)
    x = jax.random.normal(kx, (N, C_IN, H, W), dtype=jnp.float32)
    weight = jax.random.normal(kw_, (C_OUT, C_IN, KH, KW), dtype=jnp.float32) * 0.1
    bias = jax.random.normal(kb, (C_OUT,), dtype=jnp.float32) * 0.1
    gamma = 1.0 + 0.1 * jax.random.normal(kg, (C_OUT,), dtype=jnp.float32)
    beta = 0.1 * jax.random.normal(kbe, (C_OUT,), dtype=jnp.float32)

    # Test 1: default auto-sized tiles at the module's nominal shape.
    ref = conv_bn_swish_ref(x, weight, bias, gamma, beta)
    out = jax.block_until_ready(conv_bn_swish(x, weight, bias, gamma, beta))
    assert out.shape == (N, C_OUT, H, W), out.shape
    # bf16 MXU operands + bf16 intermediates => bf16-level tolerance vs the f32 reference.
    assert jnp.allclose(out, ref, rtol=5e-2, atol=5e-2), float(jnp.max(jnp.abs(out - ref)))

    # Test 2: larger spatial + small block_rows -> multi-step pipelined grid, decoupled
    # pass-2 tile, aliased pass-2 buffer, and non-trivial padded tail rows.
    x2 = jax.random.normal(kx, (2, C_IN, 30, 30), dtype=jnp.float32)
    ref2 = conv_bn_swish_ref(x2, weight, bias, gamma, beta)
    out2 = jax.block_until_ready(
        conv_bn_swish(x2, weight, bias, gamma, beta, block_rows=512))
    assert out2.shape == (2, C_OUT, 30, 30), out2.shape
    assert jnp.allclose(out2, ref2, rtol=5e-2, atol=5e-2), float(jnp.max(jnp.abs(out2 - ref2)))

    print("KERNEL_OK")
</pallas_src>

<mosaic_0001>
module attributes {stable_mosaic.version = 11 : i64} {
  func.func @_conv_stats_kernel(%arg0: i32, %arg1: memref<16x1152xbf16, #tpu.memory_space<vmem>>, %arg2: memref<1152x256xbf16, #tpu.memory_space<vmem>>, %arg3: memref<16x256xbf16, #tpu.memory_space<vmem>>, %arg4: memref<1x2x256xf32, #tpu.memory_space<vmem>>) attributes {dimension_semantics = [#tpu.dimension_semantics<parallel>], iteration_bounds = array<i64: 1>, scalar_prefetch = 0 : i64, scratch_operands = 0 : i64, tpu.core_type = #tpu.core_type<tc>, window_params = [{transform_indices = @transform_0, window_bounds = array<i64: 16, 1152>}, {pipeline_mode = #tpu.pipeline_mode<synchronous>, transform_indices = @transform_1, window_bounds = array<i64: 1152, 256>}, {transform_indices = @transform_2, window_bounds = array<i64: 16, 256>}, {transform_indices = @transform_3, window_bounds = array<i64: 1, 2, 256>}]} {
    %c0 = arith.constant 0 : index
    %c0_0 = arith.constant 0 : index
    %0 = vector.load %arg1[%c0, %c0_0] : memref<16x1152xbf16, #tpu.memory_space<vmem>>, vector<16x1152xbf16>
    %c0_1 = arith.constant 0 : index
    %c0_2 = arith.constant 0 : index
    %1 = vector.load %arg2[%c0_1, %c0_2] : memref<1152x256xbf16, #tpu.memory_space<vmem>>, vector<1152x256xbf16>
    %cst = arith.constant dense<0.000000e+00> : vector<16x256xf32>
    %2 = tpu.matmul %0, %1, %cst {dimension_numbers = #tpu.dot_dimension_numbers<[1], [0], [0], [1], [0, 0, 1, 1], [], []>} : vector<16x1152xbf16>, vector<1152x256xbf16>, vector<16x256xf32> -> vector<16x256xf32>
    %3 = arith.truncf %2 : vector<16x256xf32> to vector<16x256xbf16>
    %c0_3 = arith.constant 0 : index
    %c0_4 = arith.constant 0 : index
    %4 = vector.load %arg3[%c0_3, %c0_4] : memref<16x256xbf16, #tpu.memory_space<vmem>>, vector<16x256xbf16>
    tpu.vector_store %arg3[%c0_3, %c0_4], %3 {strides = array<i32>} : memref<16x256xbf16, #tpu.memory_space<vmem>>, vector<16x256xbf16>,
    %cst_5 = arith.constant dense<0.000000e+00> : vector<256xf32>
    %5 = vector.multi_reduction <add>, %2, %cst_5 [0] : vector<16x256xf32> to vector<256xf32>
    %6 = vector.shape_cast %5 : vector<256xf32> to vector<1x256xf32>
    %7 = arith.mulf %2, %2 : vector<16x256xf32>
    %cst_6 = arith.constant dense<0.000000e+00> : vector<256xf32>
    %8 = vector.multi_reduction <add>, %7, %cst_6 [0] : vector<16x256xf32> to vector<256xf32>
    %9 = vector.shape_cast %8 : vector<256xf32> to vector<1x256xf32>
    %10 = tpu.concatenate %6, %9 in 0 : vector<1x256xf32>, vector<1x256xf32> -> vector<2x256xf32>
    %11 = vector.shape_cast %10 : vector<2x256xf32> to vector<1x2x256xf32>
    %c0_7 = arith.constant 0 : index
    %c0_8 = arith.constant 0 : index
    %c0_9 = arith.constant 0 : index
    %12 = vector.load %arg4[%c0_7, %c0_8, %c0_9] : memref<1x2x256xf32, #tpu.memory_space<vmem>>, vector<1x2x256xf32>
    tpu.vector_store %arg4[%c0_7, %c0_8, %c0_9], %11 {strides = array<i32>} : memref<1x2x256xf32, #tpu.memory_space<vmem>>, vector<1x2x256xf32>,
    return
  }
  func.func @transform_0(%arg0: i32) -> (i32, i32) {
    %c0_i32 = arith.constant 0 : i32
    %c0_i32_0 = arith.constant 0 : i32
    return %arg0, %c0_i32 : i32, i32
  }
  func.func @transform_1(%arg0: i32) -> (i32, i32) {
    %c0_i32 = arith.constant 0 : i32
    %c0_i32_0 = arith.constant 0 : i32
    %c0_i32_1 = arith.constant 0 : i32
    return %c0_i32, %c0_i32_0 : i32, i32
  }
  func.func @transform_2(%arg0: i32) -> (i32, i32) {
    %c0_i32 = arith.constant 0 : i32
    %c0_i32_0 = arith.constant 0 : i32
    return %arg0, %c0_i32 : i32, i32
  }
  func.func @transform_3(%arg0: i32) -> (i32, i32, i32) {
    %c0_i32 = arith.constant 0 : i32
    %c0_i32_0 = arith.constant 0 : i32
    %c0_i32_1 = arith.constant 0 : i32
    return %arg0, %c0_i32, %c0_i32_0 : i32, i32, i32
  }
}

module attributes {stable_mosaic.version = 11 : i64} {
  func.func @_bn_swish_kernel(%arg0: i32, %arg1: memref<16x256xbf16, #tpu.memory_space<vmem>>, %arg2: memref<1x256xf32, #tpu.memory_space<vmem>>, %arg3: memref<1x256xf32, #tpu.memory_space<vmem>>, %arg4: memref<16x256xbf16, #tpu.memory_space<vmem>>) attributes {dimension_semantics = [#tpu.dimension_semantics<parallel>], iteration_bounds = array<i64: 1>, scalar_prefetch = 0 : i64, scratch_operands = 0 : i64, tpu.core_type = #tpu.core_type<tc>, window_params = [{transform_indices = @transform_0, window_bounds = array<i64: 16, 256>}, {pipeline_mode = #tpu.pipeline_mode<synchronous>, transform_indices = @transform_1, window_bounds = array<i64: 1, 256>}, {pipeline_mode = #tpu.pipeline_mode<synchronous>, transform_indices = @transform_2, window_bounds = array<i64: 1, 256>}, {transform_indices = @transform_3, window_bounds = array<i64: 16, 256>}]} {
    %c0 = arith.constant 0 : index
    %c0_0 = arith.constant 0 : index
    %0 = vector.load %arg1[%c0, %c0_0] : memref<16x256xbf16, #tpu.memory_space<vmem>>, vector<16x256xbf16>
    %1 = arith.extf %0 : vector<16x256xbf16> to vector<16x256xf32>
    %c0_1 = arith.constant 0 : index
    %c0_2 = arith.constant 0 : index
    %2 = vector.load %arg2[%c0_1, %c0_2] : memref<1x256xf32, #tpu.memory_space<vmem>>, vector<1x256xf32>
    %3 = vector.broadcast %2 : vector<1x256xf32> to vector<16x256xf32>
    %4 = arith.mulf %1, %3 : vector<16x256xf32>
    %c0_3 = arith.constant 0 : index
    %c0_4 = arith.constant 0 : index
    %5 = vector.load %arg3[%c0_3, %c0_4] : memref<1x256xf32, #tpu.memory_space<vmem>>, vector<1x256xf32>
    %6 = vector.broadcast %5 : vector<1x256xf32> to vector<16x256xf32>
    %7 = arith.addf %4, %6 : vector<16x256xf32>
    %cst = arith.constant 5.000000e-01 : f32
    %8 = vector.broadcast %cst : f32 to vector<16x256xf32>
    %9 = arith.mulf %8, %7 : vector<16x256xf32>
    %cst_5 = arith.constant 5.000000e-01 : f32
    %10 = vector.broadcast %cst_5 : f32 to vector<16x256xf32>
    %11 = arith.mulf %10, %7 : vector<16x256xf32>
    %12 = math.tanh %11 : vector<16x256xf32>
    %cst_6 = arith.constant 1.000000e+00 : f32
    %13 = vector.broadcast %cst_6 : f32 to vector<16x256xf32>
    %14 = arith.addf %13, %12 : vector<16x256xf32>
    %15 = arith.mulf %9, %14 : vector<16x256xf32>
    %16 = arith.truncf %15 : vector<16x256xf32> to vector<16x256xbf16>
    %c0_7 = arith.constant 0 : index
    %c0_8 = arith.constant 0 : index
    %17 = vector.load %arg4[%c0_7, %c0_8] : memref<16x256xbf16, #tpu.memory_space<vmem>>, vector<16x256xbf16>
    tpu.vector_store %arg4[%c0_7, %c0_8], %16 {strides = array<i32>} : memref<16x256xbf16, #tpu.memory_space<vmem>>, vector<16x256xbf16>,
    return
  }
  func.func @transform_0(%arg0: i32) -> (i32, i32) {
    %c0_i32 = arith.constant 0 : i32
    %c0_i32_0 = arith.constant 0 : i32
    return %arg0, %c0_i32 : i32, i32
  }
  func.func @transform_1(%arg0: i32) -> (i32, i32) {
    %c0_i32 = arith.constant 0 : i32
    %c0_i32_0 = arith.constant 0 : i32
    %c0_i32_1 = arith.constant 0 : i32
    return %c0_i32, %c0_i32_0 : i32, i32
  }
  func.func @transform_2(%arg0: i32) -> (i32, i32) {
    %c0_i32 = arith.constant 0 : i32
    %c0_i32_0 = arith.constant 0 : i32
    %c0_i32_1 = arith.constant 0 : i32
    return %c0_i32, %c0_i32_0 : i32, i32
  }
  func.func @transform_3(%arg0: i32) -> (i32, i32) {
    %c0_i32 = arith.constant 0 : i32
    %c0_i32_0 = arith.constant 0 : i32
    return %arg0, %c0_i32 : i32, i32
  }
}

</mosaic_0001>

<bundles_post_ra>
// kernel: squeeze.2
= control target key start
LH: loop header
LB: loop body
LE: loop exit
PB: predicated region body
PF: predicated region fallthrough
CT: control target
= control target key end

     0   :  { %s130_s8 = smov 120   ;;  %s131_s9 = smov 88   ;;  %vm7_vm0 = vcmask 64512   ;;  %s221_s0 = inlined_call_operand.vmem [shape: f32[256], index: 0, kind: input, shape index: {}]   ;;  %s222_s1 = inlined_call_operand.vmem [shape: f32[32,8], index: 1, kind: output, shape index: {}]  }
   0x1   :  { %v4_v0 = vld [vmem:[%s221_s0] sm:$0x3]  ;;  %s129_s0 = smov 104   ;;  %s132_s10 = smov 96  }
   0x2   :  { %5 = vst [vmem:[#allocation0] sm:$0x3] %v4_v0  ;;  %s133_s11 = smov 112   ;;  %s134_s12 = smov 80  }
   0x3   :  { %s135_s13 = smov 64   ;;  %s136_s14 = smov 72  }
   0x4   :  { %s137_s15 = smov 56   ;;  %s138_s16 = smov 40  }
   0x5   :  { %s139_s17 = smov 48   ;;  %s140_s18 = smov 32  }
   0x6   :  { %s141_s19 = smov 16   ;;  %s142_s20 = smov 24  }
   0x7   :  { %s143_s21 = smov 8  }
   0x9   :  { %v21_v1 = vld [vmem:[#allocation0] sm:$0x3]  }
   0xa   :  { %v9_v2 = vld [vmem:[#allocation0] sm:$0x3]   ;;  %22 = vrot.lane.b32.xlu1 %v21_v1, %s129_s0 }
   0xb   :  { %10 = vrot.lane.b32.xlu0 %v9_v2, %s130_s8  ;;  %v33_v3 = vld [vmem:[#allocation0] sm:$0x3]  }
   0xc   :  { %34 = vrot.lane.b32.xlu2 %v33_v3, %s131_s9  ;;  %v27_v4 = vld [vmem:[#allocation0] sm:$0x3]  }
   0xd   :  { %v15_v5 = vld [vmem:[#allocation0] sm:$0x3]  }
   0xe   :  { %v39_v6 = vld [vmem:[#allocation0] sm:$0x3]  }
   0xf   :  { %v51_v7 = vld [vmem:[#allocation0] sm:$0x3]  }
  0x10   :  { %v45_v8 = vld [vmem:[#allocation0] sm:$0x3]  }
  0x11   :  { %v57_v9 = vld [vmem:[#allocation0] sm:$0x3]  }
  0x12   :  { %28 = vrot.lane.b32.xlu1 %v27_v4, %s132_s10  ;;  %v69_v10 = vld [vmem:[#allocation0] sm:$0x3]  }
  0x13   :  { %16 = vrot.lane.b32.xlu0 %v15_v5, %s133_s11  ;;  %v63_v11 = vld [vmem:[#allocation0] sm:$0x3]  }
  0x14   :  { %40 = vrot.lane.b32.xlu2 %v39_v6, %s134_s12  ;;  %v75_v12 = vld [vmem:[#allocation0] sm:$0x3]  }
  0x15   :  { %v87_v13 = vld [vmem:[#allocation0] sm:$0x3]  }
  0x16   :  { %v81_v14 = vld [vmem:[#allocation0] sm:$0x3]  }
  0x17   :  { %v93_v15 = vld [vmem:[#allocation0] sm:$0x3]  }
  0x18   :  { %v6_v21 = vld [vmem:[#allocation0] sm:$0x3]  }
  0x19   :  { %8 = vst.msk [vmem:[%s222_s1] ss:$16 sm:$0x3] %vm7_vm0, %v6_v21  }
  0x1a   :  { %52 = vrot.lane.b32.xlu1 %v51_v7, %s135_s13 }
  0x1b   :  { %46 = vrot.lane.b32.xlu0 %v45_v8, %s136_s14 }
  0x1c   :  { %58 = vrot.lane.b32.xlu2 %v57_v9, %s137_s15 }
  0x22   :  { %70 = vrot.lane.b32.xlu1 %v69_v10, %s138_s16 }
  0x23   :  { %64 = vrot.lane.b32.xlu0 %v63_v11, %s139_s17 }
  0x24   :  { %76 = vrot.lane.b32.xlu2 %v75_v12, %s140_s18 }
  0x2a   :  { %88 = vrot.lane.b32.xlu1 %v87_v13, %s141_s19 }
  0x2b   :  { %82 = vrot.lane.b32.xlu0 %v81_v14, %s142_s20 }
  0x2c   :  { %94 = vrot.lane.b32.xlu2 %v93_v15, %s143_s21 }
  0x66   :  { %v35_v16 = vpop.permute.xlu2 %34  }
  0x67   :  { %103 = vst.msk [vmem:[%s222_s1 + $0x5] ss:$16 sm:$0x3] %vm7_vm0, %v35_v16  }
  0x6e   :  { %v41_v17 = vpop.permute.xlu2 %40  }
  0x6f   :  { %104 = vst.msk [vmem:[%s222_s1 + $0x6] ss:$16 sm:$0x3] %vm7_vm0, %v41_v17  }
  0x76   :  { %v59_v18 = vpop.permute.xlu2 %58  }
  0x77   :  { %107 = vst.msk [vmem:[%s222_s1 + $0x9] ss:$16 sm:$0x3] %vm7_vm0, %v59_v18  }
  0x7c   :  { %v23_v19 = vpop.permute.xlu1 %22  }
  0x7d   :  { %v11_v20 = vpop.permute.xlu0 %10   ;;  %101 = vst.msk [vmem:[%s222_s1 + $0x3] ss:$16 sm:$0x3] %vm7_vm0, %v23_v19  }
  0x7e   :  { %99 = vst.msk [vmem:[%s222_s1 + $0x1] ss:$16 sm:$0x3] %vm7_vm0, %v11_v20   ;;  %v77_v22 = vpop.permute.xlu2 %76  }
  0x7f   :  { %110 = vst.msk [vmem:[%s222_s1 + $0xc] ss:$16 sm:$0x3] %vm7_vm0, %v77_v22  }
  0x84   :  { %v29_v23 = vpop.permute.xlu1 %28  }
  0x85   :  { %v17_v24 = vpop.permute.xlu0 %16   ;;  %102 = vst.msk [vmem:[%s222_s1 + $0x4] ss:$16 sm:$0x3] %vm7_vm0, %v29_v23  }
  0x86   :  { %100 = vst.msk [vmem:[%s222_s1 + $0x2] ss:$16 sm:$0x3] %vm7_vm0, %v17_v24   ;;  %v95_v25 = vpop.permute.xlu2 %94  }
  0x87   :  { %113 = vst.msk [vmem:[%s222_s1 + $0xf] ss:$16 sm:$0x3] %vm7_vm0, %v95_v25  }
  0x8c   :  { %v53_v26 = vpop.permute.xlu1 %52  }
  0x8d   :  { %v47_v27 = vpop.permute.xlu0 %46   ;;  %106 = vst.msk [vmem:[%s222_s1 + $0x8] ss:$16 sm:$0x3] %vm7_vm0, %v53_v26  }
  0x8e   :  { %105 = vst.msk [vmem:[%s222_s1 + $0x7] ss:$16 sm:$0x3] %vm7_vm0, %v47_v27  }
  0x94   :  { %v71_v28 = vpop.permute.xlu1 %70  }
  0x95   :  { %v65_v29 = vpop.permute.xlu0 %64   ;;  %109 = vst.msk [vmem:[%s222_s1 + $0xb] ss:$16 sm:$0x3] %vm7_vm0, %v71_v28  }
  0x96   :  { %108 = vst.msk [vmem:[%s222_s1 + $0xa] ss:$16 sm:$0x3] %vm7_vm0, %v65_v29  }
  0x9c   :  { %v89_v30 = vpop.permute.xlu1 %88  }
  0x9d   :  { %v83_v31 = vpop.permute.xlu0 %82   ;;  %112 = vst.msk [vmem:[%s222_s1 + $0xe] ss:$16 sm:$0x3] %vm7_vm0, %v89_v30  }
  0x9e   :  { %111 = vst.msk [vmem:[%s222_s1 + $0xd] ss:$16 sm:$0x3] %vm7_vm0, %v83_v31  }

// kernel: tile.18
= control target key start
LH: loop header
LB: loop body
LE: loop exit
PB: predicated region body
PF: predicated region fallthrough
CT: control target
= control target key end

     0   :  { %s40_s0 = inlined_call_operand.vmem [shape: f32[8], index: 0, kind: input, shape index: {}]   ;;  %s41_s1 = inlined_call_operand.vmem [shape: f32[32,8], index: 1, kind: output, shape index: {}]  }
   0x1   :  { %v4_v0 = vld [vmem:[%s40_s0] ss:$0 sm:$0xff] }
   0x2   :  { %5 = vst [vmem:[%s41_s1] sm:$0xff] %v4_v0 }
   0x3   :  { %12 = vst [vmem:[%s41_s1 + $0x8] sm:$0xff] %v4_v0 }
   0x4   :  { %13 = vst [vmem:[%s41_s1 + $0x10] sm:$0xff] %v4_v0 }
   0x5   :  { %14 = vst [vmem:[%s41_s1 + $0x18] sm:$0xff] %v4_v0 }

// kernel: tile.19
= control target key start
LH: loop header
LB: loop body
LE: loop exit
PB: predicated region body
PF: predicated region fallthrough
CT: control target
= control target key end

     0   :  { %s7_s6 = smov 3  ;;  %s21_s9 = smov 3  ;;  %vm4_vm0 = vcmask 64512   ;;  %vm11_vm1 = vcmask 1048512   ;;  %vm18_vm2 = vcmask 982912   ;;  %vm25_vm3 = vcmask 917312   ;;  %s233_s0 = inlined_call_operand.vmem [shape: f32[32,8], index: 0, kind: input, shape index: {}]   ;;  %s234_s1 = inlined_call_operand.vmem [shape: f32[1,256], index: 1, kind: output, shape index: {}]  }
   0x1   :  { %v123_v0 = vld [vmem:[%s233_s0 + $0xf] ss:$16 sm:%s7_s6]   ;;  %s154_s10 = smov 120   ;;  %v125_v1 = vld [vmem:[%s233_s0 + $0xd] ss:$16 sm:%s21_s9]   ;;  %s155_s13 = smov 104  }
   0x2   :  { %9 = vrot.lane.b32.xlu0 %v123_v0, %s154_s10  ;;  %23 = vrot.lane.b32.xlu1 %v125_v1, %s155_s13  ;;  %s14_s14 = smov 3  ;;  %s28_s15 = smov 3  ;;  %vm32_vm4 = vcmask 851712   ;;  %vm39_vm5 = vcmask 786112   ;;  %vm46_vm6 = vcmask 720512   ;;  %vm53_vm7 = vcmask 654912  }
   0x3   :  { %v124_v2 = vld [vmem:[%s233_s0 + $0xe] ss:$16 sm:%s14_s14]   ;;  %v126_v3 = vld [vmem:[%s233_s0 + $0xc] ss:$16 sm:%s28_s15]   ;;  %s35_s20 = smov 3  ;;  %s156_s23 = smov 112  }
   0x4   :  { %v127_v4 = vld [vmem:[%s233_s0 + $0xb] ss:$16 sm:%s35_s20]   ;;  %s157_s24 = smov 88   ;;  %s158_s25 = smov 96   ;;  %vm60_vm8 = vcmask 589312   ;;  %vm67_vm9 = vcmask 523712  }
   0x5   :  { %37 = vrot.lane.b32.xlu2 %v127_v4, %s157_s24  ;;  %s49_s26 = smov 3  ;;  %s42_s27 = smov 3  ;;  %vm74_vm10 = vcmask 458112   ;;  %vm81_vm11 = vcmask 392512   ;;  %vm88_vm12 = vcmask 326912   ;;  %vm95_vm13 = vcmask 261312  }
   0x6   :  { %s56_s28 = smov 3  ;;  %v129_v5 = vld [vmem:[%s233_s0 + $0x9] ss:$16 sm:%s49_s26]   ;;  %v128_v6 = vld [vmem:[%s233_s0 + $0xa] ss:$16 sm:%s42_s27]   ;;  %s159_s6 = smov 72  }
   0x7   :  { %v130_v7 = vld [vmem:[%s233_s0 + $0x8] ss:$16 sm:%s56_s28]   ;;  %s160_s7 = smov 80   ;;  %s161_s8 = smov 64   ;;  %vm102_vm14 = vcmask 195712   ;;  %vm109_vm15 = vcmask 130112  }
   0x8   :  { %s70_s9 = smov 3  ;;  %s63_s10 = smov 3 }
   0x9   :  { %s77_s11 = smov 3  ;;  %v132_v8 = vld [vmem:[%s233_s0 + $0x6] ss:$16 sm:%s70_s9]   ;;  %v131_v9 = vld [vmem:[%s233_s0 + $0x7] ss:$16 sm:%s63_s10]   ;;  %s162_s18 = smov 48  }
   0xa   :  { %16 = vrot.lane.b32.xlu0 %v124_v2, %s156_s23  ;;  %30 = vrot.lane.b32.xlu1 %v126_v3, %s158_s25  ;;  %v133_v10 = vld [vmem:[%s233_s0 + $0x5] ss:$16 sm:%s77_s11]   ;;  %s163_s19 = smov 56   ;;  %s164_s20 = smov 40  }
   0xb   :  { %s91_s21 = smov 3  ;;  %s84_s22 = smov 3 }
   0xc   :  { %s98_s23 = smov 3  ;;  %v135_v11 = vld [vmem:[%s233_s0 + $0x3] ss:$16 sm:%s91_s21]   ;;  %v134_v12 = vld [vmem:[%s233_s0 + $0x4] ss:$16 sm:%s84_s22]   ;;  %s165_s30 = smov 24  }
   0xd   :  { %44 = vrot.lane.b32.xlu2 %v128_v6, %s160_s7  ;;  %v136_v13 = vld [vmem:[%s233_s0 + $0x2] ss:$16 sm:%s98_s23]   ;;  %s166_s2 = smov 32   ;;  %s167_s3 = smov 16  }
   0xe   :  { %s105_s4 = smov 3  ;;  %s168_s7 = smov 8  }
   0xf   :  { %v137_v14 = vld [vmem:[%s233_s0 + $0x1] ss:$16 sm:%s105_s4]  }
  0x12   :  { %51 = vrot.lane.b32.xlu0 %v129_v5, %s159_s6  ;;  %58 = vrot.lane.b32.xlu1 %v130_v7, %s161_s8  ;;  %s2_s8 = smov 3 }
  0x13   :  { %v3_v15 = vld [vmem:[%s233_s0] ss:$16 sm:%s2_s8]  }
  0x14   :  { %5 = vst.msk [vmem:[#allocation0] ss:$8 sm:$0x3] %vm4_vm0, %v3_v15  }
  0x15   :  { %65 = vrot.lane.b32.xlu2 %v131_v9, %s163_s19 }
  0x1a   :  { %72 = vrot.lane.b32.xlu0 %v132_v8, %s162_s18  ;;  %79 = vrot.lane.b32.xlu1 %v133_v10, %s164_s20 }
  0x1d   :  { %86 = vrot.lane.b32.xlu2 %v134_v12, %s166_s2 }
  0x22   :  { %93 = vrot.lane.b32.xlu0 %v135_v11, %s165_s30  ;;  %100 = vrot.lane.b32.xlu1 %v136_v13, %s167_s3 }
  0x25   :  { %107 = vrot.lane.b32.xlu2 %v137_v14, %s168_s7 }
  0x5f   :  { %v38_v16 = vpop.permute.xlu2 %37  }
  0x67   :  { %v45_v17 = vpop.permute.xlu2 %44  }
  0x6f   :  { %v66_v19 = vpop.permute.xlu2 %65  }
  0x74   :  { %v10_v18 = vpop.permute.xlu0 %9   ;;  %v24_v20 = vpop.permute.xlu1 %23  }
  0x75   :  { %12 = vst.msk [vmem:[#allocation0] ss:$8 sm:$0x3] %vm11_vm1, %v10_v18  }
  0x77   :  { %v87_v22 = vpop.permute.xlu2 %86  }
  0x7c   :  { %v17_v21 = vpop.permute.xlu0 %16   ;;  %v31_v23 = vpop.permute.xlu1 %30  }
  0x7d   :  { %19 = vst.msk [vmem:[#allocation0] ss:$8 sm:$0x3] %vm18_vm2, %v17_v21  }
  0x7e   :  { %26 = vst.msk [vmem:[#allocation0] ss:$8 sm:$0x3] %vm25_vm3, %v24_v20  }
  0x7f   :  { %33 = vst.msk [vmem:[#allocation0] ss:$8 sm:$0x3] %vm32_vm4, %v31_v23   ;;  %v108_v25 = vpop.permute.xlu2 %107  }
  0x80   :  { %40 = vst.msk [vmem:[#allocation0] ss:$8 sm:$0x3] %vm39_vm5, %v38_v16  }
  0x81   :  { %47 = vst.msk [vmem:[#allocation0] ss:$8 sm:$0x3] %vm46_vm6, %v45_v17  }
  0x84   :  { %v52_v24 = vpop.permute.xlu0 %51   ;;  %v59_v26 = vpop.permute.xlu1 %58  }
  0x85   :  { %54 = vst.msk [vmem:[#allocation0] ss:$8 sm:$0x3] %vm53_vm7, %v52_v24  }
  0x86   :  { %61 = vst.msk [vmem:[#allocation0] ss:$8 sm:$0x3] %vm60_vm8, %v59_v26  }
  0x87   :  { %68 = vst.msk [vmem:[#allocation0] ss:$8 sm:$0x3] %vm67_vm9, %v66_v19  }
  0x8c   :  { %v73_v27 = vpop.permute.xlu0 %72   ;;  %v80_v28 = vpop.permute.xlu1 %79  }
  0x8d   :  { %75 = vst.msk [vmem:[#allocation0] ss:$8 sm:$0x3] %vm74_vm10, %v73_v27  }
  0x8e   :  { %82 = vst.msk [vmem:[#allocation0] ss:$8 sm:$0x3] %vm81_vm11, %v80_v28  }
  0x8f   :  { %89 = vst.msk [vmem:[#allocation0] ss:$8 sm:$0x3] %vm88_vm12, %v87_v22  }
  0x94   :  { %v94_v29 = vpop.permute.xlu0 %93   ;;  %v101_v30 = vpop.permute.xlu1 %100  }
  0x95   :  { %96 = vst.msk [vmem:[#allocation0] ss:$8 sm:$0x3] %vm95_vm13, %v94_v29  }
  0x96   :  { %103 = vst.msk [vmem:[#allocation0] ss:$8 sm:$0x3] %vm102_vm14, %v101_v30  }
  0x97   :  { %110 = vst.msk [vmem:[#allocation0] ss:$8 sm:$0x3] %vm109_vm15, %v108_v25  }
  0x9e   :  { %v113_v31 = vld [vmem:[#allocation0] sm:$0x1]  ;;  %v118_v32 = vld [vmem:[#allocation0 + $0x8] sm:$0x1] }
  0x9f   :  { %116 = vst [vmem:[%s234_s1] sm:$0x1] %v113_v31 }
  0xa0   :  { %138 = vst [vmem:[%s234_s1 + $0x1] sm:$0x1] %v118_v32 }

// kernel: conv_bn_swish.2
= control target key start
LH: loop header
LB: loop body
LE: loop exit
PB: predicated region body
PF: predicated region fallthrough
CT: control target
= control target key end

     0   :  { %vm1221_vm0 = vcmask 1040384   ;;  %vm1227_vm1 = vcmask 1041408   ;;  %s2987_s1 = inlined_call_operand.vmem [shape: bf16[1152,256], index: 1, kind: input, shape index: {}]   ;;  %s2988_s0 = inlined_call_operand.vmem [shape: bf16[16,1152], index: 0, kind: input, shape index: {}]   ;;  %s2989_s2 = inlined_call_operand.vmem [shape: bf16[16,256], index: 2, kind: output, shape index: {0}]   ;;  %s2990_s3 = inlined_call_operand.vmem [shape: f32[1,2,256], index: 3, kind: output, shape index: {1}]  }
   0x1   :  { %v1333_v0 = vld [vmem:[%s2987_s1 + $0x70] sm:$0xf]  ;;  %v1875_v1 = vld [vmem:[%s2987_s1 + $0x74] sm:$0xf0]  ;;  %v1325_v11 = vld [vmem:[%s2987_s1 + $0x60] sm:$0xf] }
   0x2   :  { %v1397_v2 = vld [vmem:[%s2987_s1 + $0xf0] sm:$0xf]  ;;  %v1334_v3 = vor.u32 %v1875_v1, %v1333_v0  ;;  %v1891_v4 = vld [vmem:[%s2987_s1 + $0xf4] sm:$0xf0]  ;;  %v1873_v13 = vld [vmem:[%s2987_s1 + $0x64] sm:$0xf0] }
   0x3   :  { %v1461_v5 = vld [vmem:[%s2987_s1 + $0x170] sm:$0xf]  ;;  %v1907_v6 = vld [vmem:[%s2987_s1 + $0x174] sm:$0xf0]  ;;  %v1398_v7 = vor.u32 %v1891_v4, %v1397_v2  ;;  %v1389_v14 = vld [vmem:[%s2987_s1 + $0xe0] sm:$0xf]  ;;  %v1326_v16 = vor.u32 %v1873_v13, %v1325_v11 }
   0x4   :  { %v1462_v8 = vor.u32 %v1907_v6, %v1461_v5  ;;  %v1525_v9 = vld [vmem:[%s2987_s1 + $0x1f0] sm:$0xf]  ;;  %v1923_v10 = vld [vmem:[%s2987_s1 + $0x1f4] sm:$0xf0]  ;;  %933 = vmatpush.bf16.msra.mxu0 %v1334_v3  ;;  %v1889_v15 = vld [vmem:[%s2987_s1 + $0xe4] sm:$0xf0] }
   0x5   :  { %v1526_v12 = vor.u32 %v1923_v10, %v1525_v9  ;;  %947 = vmatpush.bf16.msra.mxu1 %v1398_v7  ;;  %v1390_v17 = vor.u32 %v1889_v15, %v1389_v14  ;;  %v1453_v18 = vld [vmem:[%s2987_s1 + $0x160] sm:$0xf]  ;;  %v1905_v19 = vld [vmem:[%s2987_s1 + $0x164] sm:$0xf0]  ;;  %v1317_v23 = vld [vmem:[%s2987_s1 + $0x50] sm:$0xf] }
   0x6   :  { %961 = vmatpush.bf16.msra.mxu2 %v1462_v8  ;;  %v1517_v20 = vld [vmem:[%s2987_s1 + $0x1e0] sm:$0xf]  ;;  %v1454_v21 = vor.u32 %v1905_v19, %v1453_v18  ;;  %v1921_v22 = vld [vmem:[%s2987_s1 + $0x1e4] sm:$0xf0]  ;;  %v1871_v24 = vld [vmem:[%s2987_s1 + $0x54] sm:$0xf0] }
   0x7   :  { %975 = vmatpush.bf16.msra.mxu3 %v1526_v12  ;;  %v1518_v25 = vor.u32 %v1921_v22, %v1517_v20  ;;  %v1381_v26 = vld [vmem:[%s2987_s1 + $0xd0] sm:$0xf]  ;;  %v1887_v27 = vld [vmem:[%s2987_s1 + $0xd4] sm:$0xf0]  ;;  %v1318_v29 = vor.u32 %v1871_v24, %v1317_v23  ;;  %v1309_v35 = vld [vmem:[%s2987_s1 + $0x40] sm:$0xf] }
   0x8   :  { %v1445_v28 = vld [vmem:[%s2987_s1 + $0x150] sm:$0xf]  ;;  %934 = vmatpush.bf16.msra.mxu0 %v1326_v16  ;;  %v1903_v30 = vld [vmem:[%s2987_s1 + $0x154] sm:$0xf0]  ;;  %v1382_v33 = vor.u32 %v1887_v27, %v1381_v26  ;;  %v1869_v36 = vld [vmem:[%s2987_s1 + $0x44] sm:$0xf0] }
   0x9   :  { %v1509_v31 = vld [vmem:[%s2987_s1 + $0x1d0] sm:$0xf]  ;;  %v1919_v32 = vld [vmem:[%s2987_s1 + $0x1d4] sm:$0xf0]  ;;  %948 = vmatpush.bf16.msra.mxu1 %v1390_v17  ;;  %v1446_v34 = vor.u32 %v1903_v30, %v1445_v28  ;;  %v1373_v37 = vld [vmem:[%s2987_s1 + $0xc0] sm:$0xf]  ;;  %v1310_v44 = vor.u32 %v1869_v36, %v1309_v35 }
   0xa   :  { %962 = vmatpush.bf16.msra.mxu2 %v1454_v21  ;;  %v1510_v38 = vor.u32 %v1919_v32, %v1509_v31  ;;  %v1885_v39 = vld [vmem:[%s2987_s1 + $0xc4] sm:$0xf0]  ;;  %v1437_v40 = vld [vmem:[%s2987_s1 + $0x140] sm:$0xf]  ;;  %v1301_v47 = vld [vmem:[%s2987_s1 + $0x30] sm:$0xf] }
   0xb   :  { %976 = vmatpush.bf16.msra.mxu3 %v1518_v25  ;;  %v1901_v41 = vld [vmem:[%s2987_s1 + $0x144] sm:$0xf0]  ;;  %v1501_v42 = vld [vmem:[%s2987_s1 + $0x1c0] sm:$0xf]  ;;  %v1374_v45 = vor.u32 %v1885_v39, %v1373_v37  ;;  %v1867_v48 = vld [vmem:[%s2987_s1 + $0x34] sm:$0xf0] }
   0xc   :  { %v1917_v43 = vld [vmem:[%s2987_s1 + $0x1c4] sm:$0xf0]  ;;  %935 = vmatpush.bf16.msra.mxu0 %v1318_v29  ;;  %v1438_v46 = vor.u32 %v1901_v41, %v1437_v40  ;;  %v1365_v49 = vld [vmem:[%s2987_s1 + $0xb0] sm:$0xf]  ;;  %v1883_v51 = vld [vmem:[%s2987_s1 + $0xb4] sm:$0xf0]  ;;  %v1302_v56 = vor.u32 %v1867_v48, %v1301_v47 }
   0xd   :  { %949 = vmatpush.bf16.msra.mxu1 %v1382_v33  ;;  %v1502_v50 = vor.u32 %v1917_v43, %v1501_v42  ;;  %v1429_v52 = vld [vmem:[%s2987_s1 + $0x130] sm:$0xf]  ;;  %v1899_v53 = vld [vmem:[%s2987_s1 + $0x134] sm:$0xf0]  ;;  %v1366_v57 = vor.u32 %v1883_v51, %v1365_v49  ;;  %v1293_v59 = vld [vmem:[%s2987_s1 + $0x20] sm:$0xf] }
   0xe   :  { %963 = vmatpush.bf16.msra.mxu2 %v1446_v34  ;;  %v1493_v54 = vld [vmem:[%s2987_s1 + $0x1b0] sm:$0xf]  ;;  %v1915_v55 = vld [vmem:[%s2987_s1 + $0x1b4] sm:$0xf0]  ;;  %v1430_v58 = vor.u32 %v1899_v53, %v1429_v52  ;;  %v1865_v60 = vld [vmem:[%s2987_s1 + $0x24] sm:$0xf0] }
   0xf   :  { %977 = vmatpush.bf16.msra.mxu3 %v1510_v38  ;;  %v1357_v61 = vld [vmem:[%s2987_s1 + $0xa0] sm:$0xf]  ;;  %v1494_v62 = vor.u32 %v1915_v55, %v1493_v54  ;;  %v1881_v63 = vld [vmem:[%s2987_s1 + $0xa4] sm:$0xf0]  ;;  %v1294_v4 = vor.u32 %v1865_v60, %v1293_v59  ;;  %v1285_v7 = vld [vmem:[%s2987_s1 + $0x10] sm:$0xf] }
  0x10   :  { %936 = vmatpush.bf16.msra.mxu0 %v1310_v44  ;;  %v1421_v0 = vld [vmem:[%s2987_s1 + $0x120] sm:$0xf]  ;;  %v1897_v1 = vld [vmem:[%s2987_s1 + $0x124] sm:$0xf0]  ;;  %v1358_v5 = vor.u32 %v1881_v63, %v1357_v61  ;;  %v1863_v8 = vld [vmem:[%s2987_s1 + $0x14] sm:$0xf0] }
  0x11   :  { %950 = vmatpush.bf16.msra.mxu1 %v1374_v45  ;;  %v1485_v2 = vld [vmem:[%s2987_s1 + $0x1a0] sm:$0xf]  ;;  %v1913_v3 = vld [vmem:[%s2987_s1 + $0x1a4] sm:$0xf0]  ;;  %v1422_v6 = vor.u32 %v1897_v1, %v1421_v0  ;;  %v1349_v9 = vld [vmem:[%s2987_s1 + $0x90] sm:$0xf]  ;;  %v1286_v16 = vor.u32 %v1863_v8, %v1285_v7 }
  0x12   :  { %964 = vmatpush.bf16.msra.mxu2 %v1438_v46  ;;  %v1486_v10 = vor.u32 %v1913_v3, %v1485_v2  ;;  %v1879_v11 = vld [vmem:[%s2987_s1 + $0x94] sm:$0xf0]  ;;  %v1413_v12 = vld [vmem:[%s2987_s1 + $0x110] sm:$0xf]  ;;  %v1277_v17 = vld [vmem:[%s2987_s1] sm:$0xf] }
  0x13   :  { %978 = vmatpush.bf16.msra.mxu3 %v1502_v50  ;;  %v1895_v13 = vld [vmem:[%s2987_s1 + $0x114] sm:$0xf0]  ;;  %v1477_v14 = vld [vmem:[%s2987_s1 + $0x190] sm:$0xf]  ;;  %v1861_v18 = vld [vmem:[%s2987_s1 + $0x4] sm:$0xf0]  ;;  %v1350_v19 = vor.u32 %v1879_v11, %v1349_v9 }
  0x14   :  { %937 = vmatpush.bf16.msra.mxu0 %v1302_v56  ;;  %v1911_v15 = vld [vmem:[%s2987_s1 + $0x194] sm:$0xf0]  ;;  %v1414_v20 = vor.u32 %v1895_v13, %v1413_v12  ;;  %v1341_v21 = vld [vmem:[%s2987_s1 + $0x80] sm:$0xf]  ;;  %v1877_v22 = vld [vmem:[%s2987_s1 + $0x84] sm:$0xf0]  ;;  %v1278_v31 = vor.u32 %v1861_v18, %v1277_v17 }
  0x15   :  { %951 = vmatpush.bf16.msra.mxu1 %v1366_v57  ;;  %v1405_v23 = vld [vmem:[%s2987_s1 + $0x100] sm:$0xf]  ;;  %v1478_v24 = vor.u32 %v1911_v15, %v1477_v14  ;;  %v1893_v25 = vld [vmem:[%s2987_s1 + $0x104] sm:$0xf0]  ;;  %v1589_v26 = vld [vmem:[%s2987_s1 + $0x270] sm:$0xf]  ;;  %v1342_v35 = vor.u32 %v1877_v22, %v1341_v21 }
  0x16   :  { %965 = vmatpush.bf16.msra.mxu2 %v1430_v58  ;;  %v1939_v27 = vld [vmem:[%s2987_s1 + $0x274] sm:$0xf0]  ;;  %v1653_v28 = vld [vmem:[%s2987_s1 + $0x2f0] sm:$0xf]  ;;  %v1469_v33 = vld [vmem:[%s2987_s1 + $0x180] sm:$0xf]  ;;  %v1406_v36 = vor.u32 %v1893_v25, %v1405_v23 }
  0x17   :  { %979 = vmatpush.bf16.msra.mxu3 %v1494_v62  ;;  %v1955_v29 = vld [vmem:[%s2987_s1 + $0x2f4] sm:$0xf0]  ;;  %v1717_v30 = vld [vmem:[%s2987_s1 + $0x370] sm:$0xf]  ;;  %v1909_v34 = vld [vmem:[%s2987_s1 + $0x184] sm:$0xf0]  ;;  %v1590_v39 = vor.u32 %v1939_v27, %v1589_v26 }
  0x18   :  { %938 = vmatpush.bf16.msra.mxu0 %v1294_v4  ;;  %v1971_v32 = vld [vmem:[%s2987_s1 + $0x374] sm:$0xf0]  ;;  %v1781_v37 = vld [vmem:[%s2987_s1 + $0x3f0] sm:$0xf]  ;;  %v1654_v40 = vor.u32 %v1955_v29, %v1653_v28  ;;  %v1581_v41 = vld [vmem:[%s2987_s1 + $0x260] sm:$0xf]  ;;  %v1470_v44 = vor.u32 %v1909_v34, %v1469_v33 }
  0x19   :  { %952 = vmatpush.bf16.msra.mxu1 %v1358_v5  ;;  %v1987_v38 = vld [vmem:[%s2987_s1 + $0x3f4] sm:$0xf0]  ;;  %v1937_v42 = vld [vmem:[%s2987_s1 + $0x264] sm:$0xf0]  ;;  %v1718_v43 = vor.u32 %v1971_v32, %v1717_v30  ;;  %v1645_v45 = vld [vmem:[%s2987_s1 + $0x2e0] sm:$0xf] }
  0x1a   :  { %966 = vmatpush.bf16.msra.mxu2 %v1422_v6  ;;  %v1953_v46 = vld [vmem:[%s2987_s1 + $0x2e4] sm:$0xf0]  ;;  %v1709_v47 = vld [vmem:[%s2987_s1 + $0x360] sm:$0xf]  ;;  %v1782_v48 = vor.u32 %v1987_v38, %v1781_v37  ;;  %v1573_v52 = vld [vmem:[%s2987_s1 + $0x250] sm:$0xf]  ;;  %v1582_v56 = vor.u32 %v1937_v42, %v1581_v41 }
  0x1b   :  { %980 = vmatpush.bf16.msra.mxu3 %v1486_v10  ;;  %v1969_v49 = vld [vmem:[%s2987_s1 + $0x364] sm:$0xf0]  ;;  %v1773_v50 = vld [vmem:[%s2987_s1 + $0x3e0] sm:$0xf]  ;;  %v1855_v54 = vld [vmem:[%s2988_s0 + $0x20] sm:$0xf0]  ;;  %v1646_v57 = vor.u32 %v1953_v46, %v1645_v45 }
  0x1c   :  { %939 = vmatpush.bf16.msra.mxu0 %v1286_v16  ;;  %v1985_v51 = vld [vmem:[%s2987_s1 + $0x3e4] sm:$0xf0]  ;;  %v1241_v53 = vld [vmem:[%s2988_s0] sm:$0xf]  ;;  %v1935_v58 = vld [vmem:[%s2987_s1 + $0x254] sm:$0xf0]  ;;  %v1710_v62 = vor.u32 %v1969_v49, %v1709_v47 }
  0x1d   :  { %953 = vmatpush.bf16.msra.mxu1 %v1350_v19  ;;  %v1249_v55 = vld [vmem:[%s2988_s0 + $0x8] sm:$0xf]  ;;  %v1637_v59 = vld [vmem:[%s2987_s1 + $0x2d0] sm:$0xf]  ;;  %v2282_v60 = vor.u32 %v1855_v54, %v1241_v53  ;;  %v1856_v61 = vld [vmem:[%s2988_s0 + $0x28] sm:$0xf0]  ;;  %v1774_v3 = vor.u32 %v1985_v51, %v1773_v50  ;;  %v1574_v11 = vor.u32 %v1935_v58, %v1573_v52 }
  0x1e   :  { %967 = vmatpush.bf16.msra.mxu2 %v1414_v20  ;;  %v1951_v63 = vld [vmem:[%s2987_s1 + $0x2d4] sm:$0xf0]  ;;  %v1701_v0 = vld [vmem:[%s2987_s1 + $0x350] sm:$0xf]  ;;  %v2296_v2 = vor.u32 %v1856_v61, %v1249_v55  ;;  %v1851_v5 = vld [vmem:[%s2988_s0 + $0x4] sm:$0xf] }
  0x1f   :  { %981 = vmatpush.bf16.msra.mxu3 %v1478_v24  ;;  %v1967_v1 = vld [vmem:[%s2987_s1 + $0x354] sm:$0xf0]  ;;  %v1765_v4 = vld [vmem:[%s2987_s1 + $0x3d0] sm:$0xf]  ;;  %v1243_v6 = vld [vmem:[%s2988_s0 + $0x24] sm:$0xf0]  ;;  %v1638_v12 = vor.u32 %v1951_v63, %v1637_v59 }
  0x20   :  { %940 = vmatpush.bf16.msra.mxu0 %v1278_v31  ;;  %v1983_v7 = vld [vmem:[%s2987_s1 + $0x3d4] sm:$0xf0]  ;;  %v2312_v8 = vor.u32 %v1851_v5, %v1243_v6  ;;  %v1852_v9 = vld [vmem:[%s2988_s0 + $0xc] sm:$0xf]  ;;  %v1251_v10 = vld [vmem:[%s2988_s0 + $0x2c] sm:$0xf0]  ;;  %v1702_v15 = vor.u32 %v1967_v1, %v1701_v0 }
  0x21   :  { %954 = vmatpush.bf16.msra.mxu1 %v1342_v35  ;;  %v1565_v13 = vld [vmem:[%s2987_s1 + $0x240] sm:$0xf]  ;;  %v2323_v14 = vor.u32 %v1852_v9, %v1251_v10  ;;  %v1933_v16 = vld [vmem:[%s2987_s1 + $0x244] sm:$0xf0]  ;;  %v1766_v19 = vor.u32 %v1983_v7, %v1765_v4  ;;  %v1557_v26 = vld [vmem:[%s2987_s1 + $0x230] sm:$0xf] }
  0x22   :  { %968 = vmatpush.bf16.msra.mxu2 %v1406_v36  ;;  %v1629_v17 = vld [vmem:[%s2987_s1 + $0x2c0] sm:$0xf]  ;;  %v1949_v18 = vld [vmem:[%s2987_s1 + $0x2c4] sm:$0xf0]  ;;  %v1566_v24 = vor.u32 %v1933_v16, %v1565_v13  ;;  %v1931_v28 = vld [vmem:[%s2987_s1 + $0x234] sm:$0xf0] }
  0x23   :  { %982 = vmatpush.bf16.msra.mxu3 %v1470_v44  ;;  %941 = vmatmul.bf16.vlgmr.msra.gmra.mxu0 %v2282_v60  ;;  %v1693_v20 = vld [vmem:[%s2987_s1 + $0x340] sm:$0xf]  ;;  %v1965_v21 = vld [vmem:[%s2987_s1 + $0x344] sm:$0xf0]  ;;  %v1630_v25 = vor.u32 %v1949_v18, %v1629_v17  ;;  %v1621_v29 = vld [vmem:[%s2987_s1 + $0x2b0] sm:$0xf]  ;;  %v1558_v36 = vor.u32 %v1931_v28, %v1557_v26 }
  0x24   :  { %989 = vmatpush.bf16.msrb.mxu0 %v1590_v39  ;;  %955 = vmatmul.bf16.vlgmr.msra.gmra.mxu1 %v2312_v8  ;;  %v1757_v22 = vld [vmem:[%s2987_s1 + $0x3c0] sm:$0xf]  ;;  %v1981_v23 = vld [vmem:[%s2987_s1 + $0x3c4] sm:$0xf0]  ;;  %v1694_v27 = vor.u32 %v1965_v21, %v1693_v20  ;;  %v1947_v30 = vld [vmem:[%s2987_s1 + $0x2b4] sm:$0xf0] }
  0x25   :  { %1003 = vmatpush.bf16.msrb.mxu1 %v1654_v40  ;;  %969 = vmatmul.bf16.vlgmr.msra.gmra.mxu2 %v2296_v2  ;;  %v1758_v31 = vor.u32 %v1981_v23, %v1757_v22  ;;  %v1685_v32 = vld [vmem:[%s2987_s1 + $0x330] sm:$0xf]  ;;  %v1963_v33 = vld [vmem:[%s2987_s1 + $0x334] sm:$0xf0]  ;;  %v1622_v37 = vor.u32 %v1947_v30, %v1621_v29  ;;  %v1549_v38 = vld [vmem:[%s2987_s1 + $0x220] sm:$0xf] }
  0x26   :  { %1017 = vmatpush.bf16.msrb.mxu2 %v1718_v43  ;;  %983 = vmatmul.bf16.vlgmr.msra.gmra.mxu3 %v2323_v14  ;;  %v1749_v34 = vld [vmem:[%s2987_s1 + $0x3b0] sm:$0xf]  ;;  %v1979_v35 = vld [vmem:[%s2987_s1 + $0x3b4] sm:$0xf0]  ;;  %v1686_v39 = vor.u32 %v1963_v33, %v1685_v32  ;;  %v1929_v40 = vld [vmem:[%s2987_s1 + $0x224] sm:$0xf0] }
  0x27   :  { %1031 = vmatpush.bf16.msrb.mxu3 %v1782_v48  ;;  %v1613_v41 = vld [vmem:[%s2987_s1 + $0x2a0] sm:$0xf]  ;;  %v1945_v42 = vld [vmem:[%s2987_s1 + $0x2a4] sm:$0xf0]  ;;  %v1750_v43 = vor.u32 %v1979_v35, %v1749_v34  ;;  %v1550_v48 = vor.u32 %v1929_v40, %v1549_v38  ;;  %v1541_v50 = vld [vmem:[%s2987_s1 + $0x210] sm:$0xf] }
  0x28   :  { %990 = vmatpush.bf16.msrb.mxu0 %v1582_v56  ;;  %v1677_v44 = vld [vmem:[%s2987_s1 + $0x320] sm:$0xf]  ;;  %v1961_v45 = vld [vmem:[%s2987_s1 + $0x324] sm:$0xf0]  ;;  %v1614_v49 = vor.u32 %v1945_v42, %v1613_v41  ;;  %v1927_v51 = vld [vmem:[%s2987_s1 + $0x214] sm:$0xf0] }
  0x29   :  { %1004 = vmatpush.bf16.msrb.mxu1 %v1646_v57  ;;  %v1741_v46 = vld [vmem:[%s2987_s1 + $0x3a0] sm:$0xf]  ;;  %v1977_v47 = vld [vmem:[%s2987_s1 + $0x3a4] sm:$0xf0]  ;;  %v1678_v52 = vor.u32 %v1961_v45, %v1677_v44  ;;  %v1605_v53 = vld [vmem:[%s2987_s1 + $0x290] sm:$0xf]  ;;  %v1542_v1 = vor.u32 %v1927_v51, %v1541_v50 }
  0x2a   :  { %1018 = vmatpush.bf16.msrb.mxu2 %v1710_v62  ;;  %v1943_v54 = vld [vmem:[%s2987_s1 + $0x294] sm:$0xf0]  ;;  %v1669_v55 = vld [vmem:[%s2987_s1 + $0x310] sm:$0xf]  ;;  %v1742_v56 = vor.u32 %v1977_v47, %v1741_v46  ;;  %v1533_v61 = vld [vmem:[%s2987_s1 + $0x200] sm:$0xf] }
  0x2b   :  { %1032 = vmatpush.bf16.msrb.mxu3 %v1774_v3  ;;  %v1959_v57 = vld [vmem:[%s2987_s1 + $0x314] sm:$0xf0]  ;;  %v1733_v58 = vld [vmem:[%s2987_s1 + $0x390] sm:$0xf]  ;;  %v1925_v62 = vld [vmem:[%s2987_s1 + $0x204] sm:$0xf0]  ;;  %v1606_v3 = vor.u32 %v1943_v54, %v1605_v53 }
  0x2c   :  { %991 = vmatpush.bf16.msrb.mxu0 %v1574_v11  ;;  %v1975_v59 = vld [vmem:[%s2987_s1 + $0x394] sm:$0xf0]  ;;  %v1597_v63 = vld [vmem:[%s2987_s1 + $0x280] sm:$0xf]  ;;  %v1941_v0 = vld [vmem:[%s2987_s1 + $0x284] sm:$0xf0]  ;;  %v1670_v7 = vor.u32 %v1959_v57, %v1669_v55  ;;  %v1534_v20 = vor.u32 %v1925_v62, %v1533_v61 }
  0x2d   :  { %1005 = vmatpush.bf16.msrb.mxu1 %v1638_v12  ;;  %v1661_v4 = vld [vmem:[%s2987_s1 + $0x300] sm:$0xf]  ;;  %v1957_v5 = vld [vmem:[%s2987_s1 + $0x304] sm:$0xf0]  ;;  %v1845_v6 = vld [vmem:[%s2987_s1 + $0x470] sm:$0xf]  ;;  %v1734_v12 = vor.u32 %v1975_v59, %v1733_v58  ;;  %v1598_v21 = vor.u32 %v1941_v0, %v1597_v63 }
  0x2e   :  { %1019 = vmatpush.bf16.msrb.mxu2 %v1702_v15  ;;  %v2003_v9 = vld [vmem:[%s2987_s1 + $0x474] sm:$0xf0]  ;;  %v1874_v10 = vld [vmem:[%s2987_s1 + $0x74] sm:$0xf]  ;;  %v1335_v11 = vld [vmem:[%s2987_s1 + $0x78] sm:$0xf0] }
  0x2f   :  { %1033 = vmatpush.bf16.msrb.mxu3 %v1766_v19  ;;  %v1890_v13 = vld [vmem:[%s2987_s1 + $0xf4] sm:$0xf]  ;;  %v1399_v15 = vld [vmem:[%s2987_s1 + $0xf8] sm:$0xf0]  ;;  %v1725_v16 = vld [vmem:[%s2987_s1 + $0x380] sm:$0xf]  ;;  %v1846_v26 = vor.u32 %v2003_v9, %v1845_v6  ;;  %v1338_v30 = vor.u32 %v1874_v10, %v1335_v11 }
  0x30   :  { %992 = vmatpush.bf16.msrb.mxu0 %v1566_v24  ;;  %v1973_v17 = vld [vmem:[%s2987_s1 + $0x384] sm:$0xf0]  ;;  %v1257_v18 = vld [vmem:[%s2988_s0 + $0x10] sm:$0xf]  ;;  %v1857_v19 = vld [vmem:[%s2988_s0 + $0x30] sm:$0xf0] }
  0x31   :  { %1006 = vmatpush.bf16.msrb.mxu1 %v1630_v25  ;;  %v1265_v22 = vld [vmem:[%s2988_s0 + $0x18] sm:$0xf]  ;;  %v1858_v23 = vld [vmem:[%s2988_s0 + $0x38] sm:$0xf0]  ;;  %v1906_v24 = vld [vmem:[%s2987_s1 + $0x174] sm:$0xf]  ;;  %v1662_v25 = vor.u32 %v1957_v5, %v1661_v4  ;;  %v1726_v35 = vor.u32 %v1973_v17, %v1725_v16 }
  0x32   :  { %1020 = vmatpush.bf16.msrb.mxu2 %v1694_v27  ;;  %v1463_v27 = vld [vmem:[%s2987_s1 + $0x178] sm:$0xf0]  ;;  %v1853_v28 = vld [vmem:[%s2988_s0 + $0x14] sm:$0xf]  ;;  %v1259_v29 = vld [vmem:[%s2988_s0 + $0x34] sm:$0xf0]  ;;  %v2506_v40 = vor.u32 %v1858_v23, %v1265_v22 }
  0x33   :  { %1034 = vmatpush.bf16.msrb.mxu3 %v1758_v31  ;;  %v1402_v31 = vor.u32 %v1890_v13, %v1399_v15  ;;  %v1854_v32 = vld [vmem:[%s2988_s0 + $0x1c] sm:$0xf]  ;;  %v1837_v33 = vld [vmem:[%s2987_s1 + $0x460] sm:$0xf]  ;;  %v2001_v34 = vld [vmem:[%s2987_s1 + $0x464] sm:$0xf0]  ;;  %v1466_v41 = vor.u32 %v1906_v24, %v1463_v27  ;;  %v2514_v44 = vor.u32 %v1853_v28, %v1259_v29 }
  0x34   :  { %993 = vmatpush.bf16.msrb.mxu0 %v1558_v36  ;;  %v2495_v36 = vor.u32 %v1857_v19, %v1257_v18  ;;  %v1872_v38 = vld [vmem:[%s2987_s1 + $0x64] sm:$0xf]  ;;  %v1838_v45 = vor.u32 %v2001_v34, %v1837_v33  ;;  %v1455_v47 = vld [vmem:[%s2987_s1 + $0x168] sm:$0xf0]  ;;  %v1829_v50 = vld [vmem:[%s2987_s1 + $0x450] sm:$0xf] }
  0x35   :  { %1007 = vmatpush.bf16.msrb.mxu1 %v1622_v37  ;;  %v1267_v37 = vld [vmem:[%s2988_s0 + $0x3c] sm:$0xf0]  ;;  %v1888_v42 = vld [vmem:[%s2987_s1 + $0xe4] sm:$0xf]  ;;  %v1999_v51 = vld [vmem:[%s2987_s1 + $0x454] sm:$0xf0] }
  0x36   :  { %1021 = vmatpush.bf16.msrb.mxu2 %v1686_v39  ;;  %v1327_v39 = vld [vmem:[%s2987_s1 + $0x68] sm:$0xf0]  ;;  %v1904_v46 = vld [vmem:[%s2987_s1 + $0x164] sm:$0xf]  ;;  %v1870_v53 = vld [vmem:[%s2987_s1 + $0x54] sm:$0xf]  ;;  %v1830_v58 = vor.u32 %v1999_v51, %v1829_v50 }
  0x37   :  { %1035 = vmatpush.bf16.msrb.mxu3 %v1750_v43  ;;  %v1391_v43 = vld [vmem:[%s2987_s1 + $0xe8] sm:$0xf0]  ;;  %v1319_v54 = vld [vmem:[%s2987_s1 + $0x58] sm:$0xf0]  ;;  %v1458_v55 = vor.u32 %v1904_v46, %v1455_v47  ;;  %v1902_v59 = vld [vmem:[%s2987_s1 + $0x154] sm:$0xf] }
  0x38   :  { %994 = vmatpush.bf16.msrb.mxu0 %v1550_v48  ;;  %v2522_v48 = vor.u32 %v1854_v32, %v1267_v37  ;;  %v1383_v57 = vld [vmem:[%s2987_s1 + $0xd8] sm:$0xf0]  ;;  %v1322_v62 = vor.u32 %v1870_v53, %v1319_v54  ;;  %v1821_v63 = vld [vmem:[%s2987_s1 + $0x440] sm:$0xf]  ;;  %v1997_v0 = vld [vmem:[%s2987_s1 + $0x444] sm:$0xf0] }
  0x39   :  { %1008 = vmatpush.bf16.msrb.mxu1 %v1614_v49  ;;  %v1330_v49 = vor.u32 %v1872_v38, %v1327_v39  ;;  %v1447_v61 = vld [vmem:[%s2987_s1 + $0x158] sm:$0xf0]  ;;  %v1311_v4 = vld [vmem:[%s2987_s1 + $0x48] sm:$0xf0]  ;;  %v1884_v6 = vld [vmem:[%s2987_s1 + $0xc4] sm:$0xf]  ;;  %v1822_v9 = vor.u32 %v1997_v0, %v1821_v63 }
  0x3a   :  { %1022 = vmatpush.bf16.msrb.mxu2 %v1678_v52  ;;  %v1394_v52 = vor.u32 %v1888_v42, %v1391_v43  ;;  %v1450_v5 = vor.u32 %v1902_v59, %v1447_v61  ;;  %v1900_v10 = vld [vmem:[%s2987_s1 + $0x144] sm:$0xf]  ;;  %v1439_v11 = vld [vmem:[%s2987_s1 + $0x148] sm:$0xf0]  ;;  %v1813_v13 = vld [vmem:[%s2987_s1 + $0x430] sm:$0xf] }
  0x3b   :  { %1036 = vmatpush.bf16.msrb.mxu3 %v1742_v56  ;;  %v1886_v56 = vld [vmem:[%s2987_s1 + $0xd4] sm:$0xf]  ;;  %v1995_v15 = vld [vmem:[%s2987_s1 + $0x434] sm:$0xf0]  ;;  %v1303_v18 = vld [vmem:[%s2987_s1 + $0x38] sm:$0xf0]  ;;  %v1442_v19 = vor.u32 %v1900_v10, %v1439_v11 }
  0x3c   :  { %995 = vmatpush.bf16.msrb.mxu0 %v1542_v1  ;;  %v1386_v1 = vor.u32 %v1886_v56, %v1383_v57  ;;  %v1866_v17 = vld [vmem:[%s2987_s1 + $0x34] sm:$0xf]  ;;  %v1814_v22 = vor.u32 %v1995_v15, %v1813_v13  ;;  %v1431_v24 = vld [vmem:[%s2987_s1 + $0x138] sm:$0xf0]  ;;  %v1993_v27 = vld [vmem:[%s2987_s1 + $0x424] sm:$0xf0] }
  0x3d   :  { %1009 = vmatpush.bf16.msrb.mxu1 %v1606_v3  ;;  %v1868_v3 = vld [vmem:[%s2987_s1 + $0x44] sm:$0xf]  ;;  %v1898_v23 = vld [vmem:[%s2987_s1 + $0x134] sm:$0xf]  ;;  %v1359_v33 = vld [vmem:[%s2987_s1 + $0xa8] sm:$0xf0] }
  0x3e   :  { %1023 = vmatpush.bf16.msrb.mxu2 %v1670_v7  ;;  %v1375_v7 = vld [vmem:[%s2987_s1 + $0xc8] sm:$0xf0]  ;;  %v1864_v29 = vld [vmem:[%s2987_s1 + $0x24] sm:$0xf]  ;;  %v1797_v39 = vld [vmem:[%s2987_s1 + $0x410] sm:$0xf] }
  0x3f   :  { %1037 = vmatpush.bf16.msrb.mxu3 %v1734_v12  ;;  %v1314_v12 = vor.u32 %v1868_v3, %v1311_v4  ;;  %v1378_v16 = vor.u32 %v1884_v6, %v1375_v7  ;;  %v1880_v32 = vld [vmem:[%s2987_s1 + $0xa4] sm:$0xf]  ;;  %v1423_v37 = vld [vmem:[%s2987_s1 + $0x128] sm:$0xf0]  ;;  %v1862_v43 = vld [vmem:[%s2987_s1 + $0x14] sm:$0xf] }
  0x40   :  { %996 = vmatpush.bf16.msrb.mxu0 %v1534_v20  ;;  %v1882_v20 = vld [vmem:[%s2987_s1 + $0xb4] sm:$0xf]  ;;  %v1362_v42 = vor.u32 %v1880_v32, %v1359_v33  ;;  %v1415_v51 = vld [vmem:[%s2987_s1 + $0x118] sm:$0xf0]  ;;  %v1789_v53 = vld [vmem:[%s2987_s1 + $0x400] sm:$0xf] }
  0x41   :  { %1010 = vmatpush.bf16.msrb.mxu1 %v1598_v21  ;;  %v1367_v21 = vld [vmem:[%s2987_s1 + $0xb8] sm:$0xf0]  ;;  %v1878_v46 = vld [vmem:[%s2987_s1 + $0x94] sm:$0xf]  ;;  %v1989_v54 = vld [vmem:[%s2987_s1 + $0x404] sm:$0xf0] }
  0x42   :  { %1024 = vmatpush.bf16.msrb.mxu2 %v1662_v25  ;;  %v1306_v25 = vor.u32 %v1866_v17, %v1303_v18  ;;  %v1370_v28 = vor.u32 %v1882_v20, %v1367_v21  ;;  %v1894_v50 = vld [vmem:[%s2987_s1 + $0x114] sm:$0xf]  ;;  %v1279_v57 = vld [vmem:[%s2987_s1 + $0x8] sm:$0xf0]  ;;  %v1527_v63 = vld [vmem:[%s2987_s1 + $0x1f8] sm:$0xf0]  ;;  %v1790_v6 = vor.u32 %v1989_v54, %v1789_v53 }
  0x43   :  { %1038 = vmatpush.bf16.msrb.mxu3 %v1726_v35  ;;  %997 = vmatmul.bf16.vlgmr.msrb.gmra.mxu0 %v2495_v36  ;;  %v1896_v35 = vld [vmem:[%s2987_s1 + $0x124] sm:$0xf]  ;;  %v1343_v59 = vld [vmem:[%s2987_s1 + $0x88] sm:$0xf0]  ;;  %v1938_v0 = vld [vmem:[%s2987_s1 + $0x274] sm:$0xf] }
  0x44   :  { %1045 = vmatpush.bf16.msra.mxu0 %v1846_v26  ;;  %1011 = vmatmul.bf16.vlgmr.msrb.gmra.mxu1 %v2514_v44  ;;  %v1805_v26 = vld [vmem:[%s2987_s1 + $0x420] sm:$0xf]  ;;  %v1426_v47 = vor.u32 %v1896_v35, %v1423_v37  ;;  %v1591_v3 = vld [vmem:[%s2987_s1 + $0x278] sm:$0xf0]  ;;  %v1954_v4 = vld [vmem:[%s2987_s1 + $0x2f4] sm:$0xf] }
  0x45   :  { %1059 = vmatpush.bf16.msra.mxu1 %v1338_v30  ;;  %1025 = vmatmul.bf16.vlgmr.msrb.gmra.mxu2 %v2506_v40  ;;  %v1295_v30 = vld [vmem:[%s2987_s1 + $0x28] sm:$0xf0]  ;;  %v1806_v34 = vor.u32 %v1993_v27, %v1805_v26  ;;  %v1892_v7 = vld [vmem:[%s2987_s1 + $0x104] sm:$0xf]  ;;  %v1273_v10 = vld [vmem:[%s2988_s0 + $0x20] sm:$0xf]  ;;  %v1594_v18 = vor.u32 %v1938_v0, %v1591_v3 }
  0x46   :  { %1073 = vmatpush.bf16.msra.mxu2 %v1402_v31  ;;  %1039 = vmatmul.bf16.vlgmr.msrb.gmra.mxu3 %v2522_v48  ;;  %v1434_v31 = vor.u32 %v1898_v23, %v1431_v24  ;;  %v1298_v38 = vor.u32 %v1864_v29, %v1295_v30  ;;  %v1859_v13 = vld [vmem:[%s2988_s0 + $0x40] sm:$0xf0]  ;;  %v1970_v15 = vld [vmem:[%s2987_s1 + $0x374] sm:$0xf]  ;;  %v1519_v20 = vld [vmem:[%s2987_s1 + $0x1e8] sm:$0xf0] }
  0x47   :  { %1087 = vmatpush.bf16.msra.mxu3 %v1466_v41  ;;  %v1991_v41 = vld [vmem:[%s2987_s1 + $0x414] sm:$0xf0]  ;;  %v1936_v23 = vld [vmem:[%s2987_s1 + $0x264] sm:$0xf]  ;;  %v1583_v24 = vld [vmem:[%s2987_s1 + $0x268] sm:$0xf0] }
  0x48   :  { %1046 = vmatpush.bf16.msra.mxu0 %v1838_v45  ;;  %v1287_v45 = vld [vmem:[%s2987_s1 + $0x18] sm:$0xf0]  ;;  %v1952_v27 = vld [vmem:[%s2987_s1 + $0x2e4] sm:$0xf]  ;;  %v1586_v32 = vor.u32 %v1936_v23, %v1583_v24  ;;  %v1918_v33 = vld [vmem:[%s2987_s1 + $0x1d4] sm:$0xf] }
  0x49   :  { %1060 = vmatpush.bf16.msra.mxu1 %v1330_v49  ;;  %v1351_v49 = vld [vmem:[%s2987_s1 + $0x98] sm:$0xf0]  ;;  %v1290_v56 = vor.u32 %v1862_v43, %v1287_v45  ;;  %v1968_v30 = vld [vmem:[%s2987_s1 + $0x364] sm:$0xf]  ;;  %v1934_v37 = vld [vmem:[%s2987_s1 + $0x254] sm:$0xf] }
  0x4a   :  { %1074 = vmatpush.bf16.msra.mxu2 %v1394_v52  ;;  %v1798_v52 = vor.u32 %v1991_v41, %v1797_v39  ;;  %v1354_v61 = vor.u32 %v1878_v46, %v1351_v49  ;;  %v1950_v41 = vld [vmem:[%s2987_s1 + $0x2d4] sm:$0xf]  ;;  %v1703_v46 = vld [vmem:[%s2987_s1 + $0x358] sm:$0xf0]  ;;  %v1916_v49 = vld [vmem:[%s2987_s1 + $0x1c4] sm:$0xf] }
  0x4b   :  { %1088 = vmatpush.bf16.msra.mxu3 %v1458_v55  ;;  %v1860_v55 = vld [vmem:[%s2987_s1 + $0x4] sm:$0xf]  ;;  %v1966_v45 = vld [vmem:[%s2987_s1 + $0x354] sm:$0xf]  ;;  %v1623_v3 = vld [vmem:[%s2987_s1 + $0x2b8] sm:$0xf0] }
  0x4c   :  { %1047 = vmatpush.bf16.msra.mxu0 %v1830_v58  ;;  %v1876_v58 = vld [vmem:[%s2987_s1 + $0x84] sm:$0xf]  ;;  %v1282_v11 = vor.u32 %v1860_v55, %v1279_v57  ;;  %v1706_v53 = vor.u32 %v1966_v45, %v1703_v46  ;;  %v1479_v23 = vld [vmem:[%s2987_s1 + $0x198] sm:$0xf0] }
  0x4d   :  { %1061 = vmatpush.bf16.msra.mxu1 %v1322_v62  ;;  %v1922_v62 = vld [vmem:[%s2987_s1 + $0x1f4] sm:$0xf]  ;;  %v1346_v17 = vor.u32 %v1876_v58, %v1343_v59  ;;  %v1948_v54 = vld [vmem:[%s2987_s1 + $0x2c4] sm:$0xf]  ;;  %v1495_v59 = vld [vmem:[%s2987_s1 + $0x1b8] sm:$0xf0] }
  0x4e   :  { %1075 = vmatpush.bf16.msra.mxu2 %v1386_v1  ;;  %v1418_v1 = vor.u32 %v1894_v50, %v1415_v51  ;;  %v1503_v50 = vld [vmem:[%s2987_s1 + $0x1c8] sm:$0xf0]  ;;  %v1914_v58 = vld [vmem:[%s2987_s1 + $0x1b4] sm:$0xf]  ;;  %v1783_v45 = vld [vmem:[%s2987_s1 + $0x3f8] sm:$0xf0] }
  0x4f   :  { %1089 = vmatpush.bf16.msra.mxu3 %v1450_v5  ;;  %v1655_v5 = vld [vmem:[%s2987_s1 + $0x2f8] sm:$0xf0]  ;;  %v1506_v55 = vor.u32 %v1916_v49, %v1503_v50  ;;  %v2002_v49 = vld [vmem:[%s2987_s1 + $0x474] sm:$0xf] }
  0x50   :  { %1048 = vmatpush.bf16.msra.mxu0 %v1822_v9  ;;  %v1407_v9 = vld [vmem:[%s2987_s1 + $0x108] sm:$0xf0]  ;;  %v1658_v21 = vor.u32 %v1954_v4, %v1655_v5  ;;  %v1498_v4 = vor.u32 %v1914_v58, %v1495_v59  ;;  %v1962_v5 = vld [vmem:[%s2987_s1 + $0x334] sm:$0xf]  ;;  %v1847_v50 = vld [vmem:[%s2987_s1 + $0x478] sm:$0xf0] }
  0x51   :  { %1062 = vmatpush.bf16.msra.mxu1 %v1314_v12  ;;  %v1530_v12 = vor.u32 %v1922_v62, %v1527_v63  ;;  %v1930_v62 = vld [vmem:[%s2987_s1 + $0x234] sm:$0xf]  ;;  %v1559_v63 = vld [vmem:[%s2987_s1 + $0x238] sm:$0xf0]  ;;  %v2000_v58 = vld [vmem:[%s2987_s1 + $0x464] sm:$0xf] }
  0x52   :  { %1076 = vmatpush.bf16.msra.mxu2 %v1378_v16  ;;  %v1719_v16 = vld [vmem:[%s2987_s1 + $0x378] sm:$0xf0]  ;;  %v1839_v59 = vld [vmem:[%s2987_s1 + $0x468] sm:$0xf0] }
  0x53   :  { %1090 = vmatpush.bf16.msra.mxu3 %v1442_v19  ;;  %v1920_v19 = vld [vmem:[%s2987_s1 + $0x1e4] sm:$0xf]  ;;  %v1722_v26 = vor.u32 %v1970_v15, %v1719_v16 }
  0x54   :  { %1049 = vmatpush.bf16.msra.mxu0 %v1814_v22  ;;  %v1410_v22 = vor.u32 %v1892_v7, %v1407_v9  ;;  %v1522_v29 = vor.u32 %v1920_v19, %v1519_v20  ;;  %v1562_v7 = vor.u32 %v1930_v62, %v1559_v63  ;;  %v1912_v9 = vld [vmem:[%s2987_s1 + $0x1a4] sm:$0xf]  ;;  %v1679_v20 = vld [vmem:[%s2987_s1 + $0x328] sm:$0xf0]  ;;  %v1842_v62 = vor.u32 %v2000_v58, %v1839_v59  ;;  %v1982_v63 = vld [vmem:[%s2987_s1 + $0x3d4] sm:$0xf] }
  0x55   :  { %1063 = vmatpush.bf16.msra.mxu1 %v1306_v25  ;;  %v2714_v25 = vor.u32 %v1859_v13, %v1273_v10  ;;  %v1487_v10 = vld [vmem:[%s2987_s1 + $0x1a8] sm:$0xf0]  ;;  %v1944_v16 = vld [vmem:[%s2987_s1 + $0x2a4] sm:$0xf] }
  0x56   :  { %1077 = vmatpush.bf16.msra.mxu2 %v1370_v28  ;;  %v1647_v28 = vld [vmem:[%s2987_s1 + $0x2e8] sm:$0xf0]  ;;  %v1960_v19 = vld [vmem:[%s2987_s1 + $0x324] sm:$0xf] }
  0x57   :  { %1091 = vmatpush.bf16.msra.mxu3 %v1434_v31  ;;  %v1711_v31 = vld [vmem:[%s2987_s1 + $0x368] sm:$0xf0]  ;;  %v1650_v35 = vor.u32 %v1952_v27, %v1647_v28  ;;  %v1543_v27 = vld [vmem:[%s2987_s1 + $0x218] sm:$0xf0]  ;;  %v1682_v28 = vor.u32 %v1960_v19, %v1679_v20 }
  0x58   :  { %1050 = vmatpush.bf16.msra.mxu0 %v1806_v34  ;;  %v1511_v34 = vld [vmem:[%s2987_s1 + $0x1d8] sm:$0xf0]  ;;  %v1714_v39 = vor.u32 %v1968_v30, %v1711_v31  ;;  %v1551_v13 = vld [vmem:[%s2987_s1 + $0x228] sm:$0xf0] }
  0x59   :  { %1064 = vmatpush.bf16.msra.mxu1 %v1298_v38  ;;  %v1575_v38 = vld [vmem:[%s2987_s1 + $0x258] sm:$0xf0]  ;;  %v1514_v43 = vor.u32 %v1918_v33, %v1511_v34  ;;  %v1908_v34 = vld [vmem:[%s2987_s1 + $0x184] sm:$0xf]  ;;  %v1807_v19 = vld [vmem:[%s2987_s1 + $0x428] sm:$0xf0] }
  0x5a   :  { %1078 = vmatpush.bf16.msra.mxu2 %v1362_v42  ;;  %v1639_v42 = vld [vmem:[%s2987_s1 + $0x2d8] sm:$0xf0] }
  0x5b   :  { %1092 = vmatpush.bf16.msra.mxu3 %v1426_v47  ;;  %v1578_v47 = vor.u32 %v1934_v37, %v1575_v38  ;;  %v1642_v51 = vor.u32 %v1950_v41, %v1639_v42  ;;  %v1607_v30 = vld [vmem:[%s2987_s1 + $0x298] sm:$0xf0]  ;;  %v1471_v37 = vld [vmem:[%s2987_s1 + $0x188] sm:$0xf0]  ;;  %v1924_v38 = vld [vmem:[%s2987_s1 + $0x204] sm:$0xf] }
  0x5c   :  { %1051 = vmatpush.bf16.msra.mxu0 %v1798_v52  ;;  %v1932_v52 = vld [vmem:[%s2987_s1 + $0x244] sm:$0xf]  ;;  %v1671_v33 = vld [vmem:[%s2987_s1 + $0x318] sm:$0xf0] }
  0x5d   :  { %1065 = vmatpush.bf16.msra.mxu1 %v1290_v56  ;;  %v1964_v56 = vld [vmem:[%s2987_s1 + $0x344] sm:$0xf] }
  0x5e   :  { %1079 = vmatpush.bf16.msra.mxu2 %v1354_v61  ;;  %v1940_v42 = vld [vmem:[%s2987_s1 + $0x284] sm:$0xf] }
  0x5f   :  { %1093 = vmatpush.bf16.msra.mxu3 %v1418_v1  ;;  %v1946_v1 = vld [vmem:[%s2987_s1 + $0x2b4] sm:$0xf] }
  0x60   :  { %1052 = vmatpush.bf16.msra.mxu0 %v1790_v6  ;;  %v1687_v6 = vld [vmem:[%s2987_s1 + $0x338] sm:$0xf0] }
  0x61   :  { %1066 = vmatpush.bf16.msra.mxu1 %v1282_v11  ;;  %v1626_v11 = vor.u32 %v1946_v1, %v1623_v3  ;;  %v1690_v15 = vor.u32 %v1962_v5, %v1687_v6  ;;  %v1998_v1 = vld [vmem:[%s2987_s1 + $0x454] sm:$0xf]  ;;  %v1831_v3 = vld [vmem:[%s2987_s1 + $0x458] sm:$0xf0]  ;;  %v1759_v6 = vld [vmem:[%s2987_s1 + $0x3c8] sm:$0xf0] }
  0x62   :  { %1080 = vmatpush.bf16.msra.mxu2 %v1346_v17  ;;  %v1615_v17 = vld [vmem:[%s2987_s1 + $0x2a8] sm:$0xf0]  ;;  %v1834_v5 = vor.u32 %v1998_v1, %v1831_v3 }
  0x63   :  { %1094 = vmatpush.bf16.msra.mxu3 %v1410_v22  ;;  %1053 = vmatmul.bf16.vlgmr.msra.gmra.mxu0 %v2714_v25  ;;  %v1910_v22 = vld [vmem:[%s2987_s1 + $0x194] sm:$0xf]  ;;  %v1618_v24 = vor.u32 %v1944_v16, %v1615_v17  ;;  %v1976_v16 = vld [vmem:[%s2987_s1 + $0x3a4] sm:$0xf]  ;;  %v1743_v17 = vld [vmem:[%s2987_s1 + $0x3a8] sm:$0xf0] }
  0x64   :  { %1101 = vmatpush.bf16.msrb.mxu0 %v1530_v12  ;;  %1067 = vmatmul.bf16.vlgmr.msra.gmra.mxu1 %v2282_v60  ;;  %v1695_v60 = vld [vmem:[%s2987_s1 + $0x348] sm:$0xf0]  ;;  %v1928_v12 = vld [vmem:[%s2987_s1 + $0x224] sm:$0xf]  ;;  %v1482_v31 = vor.u32 %v1910_v22, %v1479_v23  ;;  %v1746_v20 = vor.u32 %v1976_v16, %v1743_v17  ;;  %v1974_v22 = vld [vmem:[%s2987_s1 + $0x394] sm:$0xf] }
  0x65   :  { %1115 = vmatpush.bf16.msrb.mxu1 %v1594_v18  ;;  %1081 = vmatmul.bf16.vlgmr.msra.gmra.mxu2 %v2312_v8  ;;  %v1567_v8 = vld [vmem:[%s2987_s1 + $0x248] sm:$0xf0]  ;;  %v1698_v0 = vor.u32 %v1964_v56, %v1695_v60  ;;  %v1490_v18 = vor.u32 %v1912_v9, %v1487_v10  ;;  %v1984_v56 = vld [vmem:[%s2987_s1 + $0x3e4] sm:$0xf]  ;;  %v1978_v9 = vld [vmem:[%s2987_s1 + $0x3b4] sm:$0xf] }
  0x66   :  { %1129 = vmatpush.bf16.msrb.mxu2 %v1658_v21  ;;  %1095 = vmatmul.bf16.vlgmr.msra.gmra.mxu3 %v2296_v2  ;;  %v1631_v2 = vld [vmem:[%s2987_s1 + $0x2c8] sm:$0xf0]  ;;  %v1570_v57 = vor.u32 %v1932_v52, %v1567_v8  ;;  %v1554_v21 = vor.u32 %v1928_v12, %v1551_v13  ;;  %v1956_v52 = vld [vmem:[%s2987_s1 + $0x304] sm:$0xf]  ;;  %v1751_v10 = vld [vmem:[%s2987_s1 + $0x3b8] sm:$0xf0] }
  0x67   :  { %1143 = vmatpush.bf16.msrb.mxu3 %v1722_v26  ;;  %v1634_v61 = vor.u32 %v1948_v54, %v1631_v2  ;;  %v1926_v26 = vld [vmem:[%s2987_s1 + $0x214] sm:$0xf]  ;;  %v1663_v8 = vld [vmem:[%s2987_s1 + $0x308] sm:$0xf0]  ;;  %v1815_v12 = vld [vmem:[%s2987_s1 + $0x438] sm:$0xf0]  ;;  %v1754_v13 = vor.u32 %v1978_v9, %v1751_v10 }
  0x68   :  { %1102 = vmatpush.bf16.msrb.mxu0 %v1522_v29  ;;  %v1942_v29 = vld [vmem:[%s2987_s1 + $0x294] sm:$0xf]  ;;  %v1775_v60 = vld [vmem:[%s2987_s1 + $0x3e8] sm:$0xf0]  ;;  %v1735_v23 = vld [vmem:[%s2987_s1 + $0x398] sm:$0xf0] }
  0x69   :  { %1116 = vmatpush.bf16.msrb.mxu1 %v1586_v32  ;;  %v1958_v32 = vld [vmem:[%s2987_s1 + $0x314] sm:$0xf]  ;;  %v1610_v41 = vor.u32 %v1942_v29, %v1607_v30  ;;  %v1972_v29 = vld [vmem:[%s2987_s1 + $0x384] sm:$0xf]  ;;  %v1727_v30 = vld [vmem:[%s2987_s1 + $0x388] sm:$0xf0] }
  0x6a   :  { %1130 = vmatpush.bf16.msrb.mxu2 %v1650_v35  ;;  %v1546_v35 = vor.u32 %v1926_v26, %v1543_v27  ;;  %v1674_v46 = vor.u32 %v1958_v32, %v1671_v33  ;;  %v1799_v26 = vld [vmem:[%s2987_s1 + $0x418] sm:$0xf0]  ;;  %v1738_v27 = vor.u32 %v1974_v22, %v1735_v23  ;;  %v1791_v32 = vld [vmem:[%s2987_s1 + $0x408] sm:$0xf0]  ;;  %v1730_v33 = vor.u32 %v1972_v29, %v1727_v30 }
  0x6b   :  { %1144 = vmatpush.bf16.msrb.mxu3 %v1714_v39  ;;  %v1535_v39 = vld [vmem:[%s2987_s1 + $0x208] sm:$0xf0] }
  0x6c   :  { %1103 = vmatpush.bf16.msrb.mxu0 %v1514_v43  ;;  %v1986_v43 = vld [vmem:[%s2987_s1 + $0x3f4] sm:$0xf] }
  0x6d   :  { %1117 = vmatpush.bf16.msrb.mxu1 %v1578_v47  ;;  %v1599_v47 = vld [vmem:[%s2987_s1 + $0x288] sm:$0xf0]  ;;  %v1786_v54 = vor.u32 %v1986_v43, %v1783_v45 }
  0x6e   :  { %1131 = vmatpush.bf16.msrb.mxu2 %v1642_v51  ;;  %v1474_v51 = vor.u32 %v1908_v34, %v1471_v37  ;;  %v1602_v2 = vor.u32 %v1940_v42, %v1599_v47 }
  0x6f   :  { %1145 = vmatpush.bf16.msrb.mxu3 %v1706_v53  ;;  %v1538_v53 = vor.u32 %v1924_v38, %v1535_v39 }
  0x70   :  { %1104 = vmatpush.bf16.msrb.mxu0 %v1506_v55  ;;  %v1850_v55 = vor.u32 %v2002_v49, %v1847_v50 }
  0x71   :  { %1118 = vmatpush.bf16.msrb.mxu1 %v1570_v57  ;;  %v1666_v57 = vor.u32 %v1956_v52, %v1663_v8 }
  0x72   :  { %1132 = vmatpush.bf16.msrb.mxu2 %v1634_v61  ;;  %v1778_v61 = vor.u32 %v1984_v56, %v1775_v60 }
  0x73   :  { %1146 = vmatpush.bf16.msrb.mxu3 %v1698_v0  ;;  %v1767_v0 = vld [vmem:[%s2987_s1 + $0x3d8] sm:$0xf0] }
  0x74   :  { %1105 = vmatpush.bf16.msrb.mxu0 %v1498_v4  ;;  %v1770_v4 = vor.u32 %v1982_v63, %v1767_v0 }
  0x75   :  { %1119 = vmatpush.bf16.msrb.mxu1 %v1562_v7 }
  0x76   :  { %1133 = vmatpush.bf16.msrb.mxu2 %v1626_v11  ;;  %v1994_v11 = vld [vmem:[%s2987_s1 + $0x434] sm:$0xf] }
  0x77   :  { %1147 = vmatpush.bf16.msrb.mxu3 %v1690_v15  ;;  %v1818_v15 = vor.u32 %v1994_v11, %v1815_v12 }
  0x78   :  { %1106 = vmatpush.bf16.msrb.mxu0 %v1490_v18  ;;  %v1992_v18 = vld [vmem:[%s2987_s1 + $0x424] sm:$0xf] }
  0x79   :  { %1120 = vmatpush.bf16.msrb.mxu1 %v1554_v21  ;;  %v1810_v21 = vor.u32 %v1992_v18, %v1807_v19 }
  0x7a   :  { %1134 = vmatpush.bf16.msrb.mxu2 %v1618_v24  ;;  %v1990_v24 = vld [vmem:[%s2987_s1 + $0x414] sm:$0xf] }
  0x7b   :  { %1148 = vmatpush.bf16.msrb.mxu3 %v1682_v28  ;;  %v1802_v28 = vor.u32 %v1990_v24, %v1799_v26 }
  0x7c   :  { %1107 = vmatpush.bf16.msrb.mxu0 %v1482_v31  ;;  %v1988_v31 = vld [vmem:[%s2987_s1 + $0x404] sm:$0xf] }
  0x7d   :  { %1121 = vmatpush.bf16.msrb.mxu1 %v1546_v35  ;;  %v1794_v34 = vor.u32 %v1988_v31, %v1791_v32 }
  0x7e   :  { %1135 = vmatpush.bf16.msrb.mxu2 %v1610_v41 }
  0x7f   :  { %1149 = vmatpush.bf16.msrb.mxu3 %v1674_v46 }
  0x80   :  { %1108 = vmatpush.bf16.msrb.mxu0 %v1474_v51 }
  0x81   :  { %1122 = vmatpush.bf16.msrb.mxu1 %v1538_v53 }
  0x82   :  { %1136 = vmatpush.bf16.msrb.mxu2 %v1602_v2 }
  0x83   :  { %1150 = vmatpush.bf16.msrb.mxu3 %v1666_v57  ;;  %1109 = vmatmul.bf16.vlgmr.msrb.gmra.mxu0 %v2323_v14  ;;  %v1980_v14 = vld [vmem:[%s2987_s1 + $0x3c4] sm:$0xf] }
  0x84   :  { %1157 = vmatpush.bf16.msra.mxu0 %v1786_v54  ;;  %1123 = vmatmul.bf16.vlgmr.msrb.gmra.mxu1 %v2495_v36  ;;  %v1996_v36 = vld [vmem:[%s2987_s1 + $0x444] sm:$0xf] }
  0x85   :  { %1171 = vmatpush.bf16.msra.mxu1 %v1850_v55  ;;  %1137 = vmatmul.bf16.vlgmr.msrb.gmra.mxu2 %v2514_v44  ;;  %v1823_v44 = vld [vmem:[%s2987_s1 + $0x448] sm:$0xf0] }
  0x86   :  { %1151 = vmatmul.bf16.vlgmr.msrb.gmra.mxu3 %v2506_v40  ;;  %v1762_v40 = vor.u32 %v1980_v14, %v1759_v6  ;;  %v1826_v7 = vor.u32 %v1996_v36, %v1823_v44 }
  0x88   :  { %1158 = vmatpush.bf16.msra.mxu0 %v1778_v61 }
  0x89   :  { %1172 = vmatpush.bf16.msra.mxu1 %v1842_v62 }
  0x8c   :  { %1159 = vmatpush.bf16.msra.mxu0 %v1770_v4 }
  0x8d   :  { %1173 = vmatpush.bf16.msra.mxu1 %v1834_v5 }
  0x90   :  { %1160 = vmatpush.bf16.msra.mxu0 %v1762_v40 }
  0x91   :  { %1174 = vmatpush.bf16.msra.mxu1 %v1826_v7 }
  0x94   :  { %1161 = vmatpush.bf16.msra.mxu0 %v1754_v13 }
  0x95   :  { %1175 = vmatpush.bf16.msra.mxu1 %v1818_v15 }
  0x98   :  { %1162 = vmatpush.bf16.msra.mxu0 %v1746_v20 }
  0x99   :  { %1176 = vmatpush.bf16.msra.mxu1 %v1810_v21 }
  0x9c   :  { %1163 = vmatpush.bf16.msra.mxu0 %v1738_v27 }
  0x9d   :  { %1177 = vmatpush.bf16.msra.mxu1 %v1802_v28 }
  0xa0   :  { %1164 = vmatpush.bf16.msra.mxu0 %v1730_v33  ;;  %v942_v37 = vpop.f32.mrf.mxu0 }
  0xa1   :  { %1178 = vmatpush.bf16.msra.mxu1 %v1794_v34  ;;  %v956_v35 = vpop.f32.mrf.mxu1 }
  0xa3   :  { %1165 = vmatmul.bf16.vlgmr.msra.gmra.mxu0 %v2522_v48 }
  0xa4   :  { %1179 = vmatmul.bf16.vlgmr.msra.gmra.mxu1 %v2714_v25  ;;  %v957_v25 = vadd.f32 %v956_v35, %v942_v37 }
  0xa8   :  { %v970_v38 = vpop.f32.mrf.mxu2  ;;  %v944_v41 = vpop.f32.mrf.mxu0 }
  0xa9   :  { %v958_v39 = vpop.f32.mrf.mxu1  ;;  %v984_v42 = vpop.f32.mrf.mxu3  ;;  %v971_v58 = vadd.f32 %v970_v38, %v957_v25 }
  0xaa   :  { %v959_v55 = vadd.f32 %v958_v39, %v944_v41 }
  0xab   :  { %v985_v61 = vadd.f32 %v984_v42, %v971_v58 }
  0xb0   :  { %v972_v43 = vpop.f32.mrf.mxu2 }
  0xb1   :  { %v986_v46 = vpop.f32.mrf.mxu3  ;;  %v973_v59 = vadd.f32 %v972_v43, %v959_v55 }
  0xb3   :  { %v987_v0 = vadd.f32 %v986_v46, %v973_v59 }
  0xc0   :  { %v998_v47 = vpop.f32.mrf.mxu0 }
  0xc1   :  { %v1012_v45 = vpop.f32.mrf.mxu1  ;;  %v999_v3 = vadd.f32 %v998_v47, %v985_v61 }
  0xc3   :  { %v1013_v36 = vadd.f32 %v1012_v45, %v999_v3 }
  0xc8   :  { %v1026_v49 = vpop.f32.mrf.mxu2  ;;  %v1000_v51 = vpop.f32.mrf.mxu0 }
  0xc9   :  { %v1014_v50 = vpop.f32.mrf.mxu1  ;;  %v1040_v52 = vpop.f32.mrf.mxu3  ;;  %v1001_v4 = vadd.f32 %v1000_v51, %v987_v0  ;;  %v1027_v10 = vadd.f32 %v1026_v49, %v1013_v36 }
  0xcb   :  { %v1015_v44 = vadd.f32 %v1014_v50, %v1001_v4  ;;  %v1041_v18 = vadd.f32 %v1040_v52, %v1027_v10 }
  0xd0   :  { %v1028_v8 = vpop.f32.mrf.mxu2 }
  0xd1   :  { %v1042_v48 = vpop.f32.mrf.mxu3  ;;  %v1029_v7 = vadd.f32 %v1028_v8, %v1015_v44 }
  0xd3   :  { %v1043_v15 = vadd.f32 %v1042_v48, %v1029_v7 }
  0xe0   :  { %v1054_v54 = vpop.f32.mrf.mxu0 }
  0xe1   :  { %v1068_v53 = vpop.f32.mrf.mxu1  ;;  %v1055_v22 = vadd.f32 %v1054_v54, %v1041_v18 }
  0xe3   :  { %v1203_v29 = vmul.f32 %v1055_v22, %v1055_v22 }
  0xe8   :  { %v1082_v2 = vpop.f32.mrf.mxu2  ;;  %v1056_v60 = vpop.f32.mrf.mxu0 }
  0xe9   :  { %v1070_v56 = vpop.f32.mrf.mxu1  ;;  %v1096_v57 = vpop.f32.mrf.mxu3  ;;  %v1083_v62 = vadd.f32 %v1082_v2, %v1068_v53  ;;  %v1057_v19 = vadd.f32 %v1056_v60, %v1043_v15 }
  0xeb   :  { %v1097_v5 = vadd.f32 %v1096_v57, %v1083_v62  ;;  %v1205_v24 = vmul.f32 %v1057_v19, %v1057_v19  ;;  %v1189_v37 = vadd.f32 %v1057_v19, %v1055_v22 }
  0xed   :  { %v1207_v33 = vadd.f32 %v1205_v24, %v1203_v29  ;;  %v1190_v43 = vrot.slane %v1189_v37, 4 }
  0xef   :  { %v1208_v41 = vrot.slane %v1207_v33, 4  ;;  %v1191_v51 = vadd.f32 %v1190_v43, %v1189_v37 }
  0xf0   :  { %v1084_v63 = vpop.f32.mrf.mxu2 }
  0xf1   :  { %v1098_v6 = vpop.f32.mrf.mxu3  ;;  %v1085_v11 = vadd.f32 %v1084_v63, %v1070_v56  ;;  %v1209_v49 = vadd.f32 %v1208_v41, %v1207_v33  ;;  %v1192_v55 = vrot.slane %v1191_v51, 2 }
  0xf3   :  { %v1099_v20 = vadd.f32 %v1098_v6, %v1085_v11  ;;  %v1210_v48 = vrot.slane %v1209_v49, 2  ;;  %v1193_v61 = vadd.f32 %v1192_v55, %v1191_v51 }
  0xf5   :  { %v1211_v57 = vadd.f32 %v1210_v48, %v1209_v49  ;;  %v1194_v4 = vrot.slane %v1193_v61, 1 }
  0xf7   :  { %v1212_v0 = vrot.slane %v1211_v57, 1  ;;  %v1195_v44 = vadd.f32 %v1194_v4, %v1193_v61 }
 0x100   :  { %v1110_v1 = vpop.f32.mrf.mxu0 }
 0x101   :  { %v1124_v14 = vpop.f32.mrf.mxu1  ;;  %v1111_v40 = vadd.f32 %v1110_v1, %v1097_v5 }
 0x103   :  { %v1125_v12 = vadd.f32 %v1124_v14, %v1111_v40  ;;  %v1213_v14 = vadd.f32 %v1212_v0, %v1211_v57 }
 0x108   :  { %v1138_v9 = vpop.f32.mrf.mxu2  ;;  %v1112_v13 = vpop.f32.mrf.mxu0 }
 0x109   :  { %v1126_v16 = vpop.f32.mrf.mxu1  ;;  %v1152_v17 = vpop.f32.mrf.mxu3  ;;  %v1139_v21 = vadd.f32 %v1138_v9, %v1125_v12  ;;  %v1113_v23 = vadd.f32 %v1112_v13, %v1099_v20  ;;  %v1222_v9 = vsel %vm1221_vm0, %v1195_v44, %v1213_v14 }
 0x10b   :  { %v1153_v26 = vadd.f32 %v1152_v17, %v1139_v21  ;;  %v1127_v30 = vadd.f32 %v1126_v16, %v1113_v23 }
 0x110   :  { %v1140_v27 = vpop.f32.mrf.mxu2 }
 0x111   :  { %v1141_v34 = vadd.f32 %v1140_v27, %v1127_v30  ;;  %v1154_v38 = vpop.f32.mrf.mxu3 }
 0x113   :  { %v1155_v42 = vadd.f32 %v1154_v38, %v1141_v34 }
 0x120   :  { %v1166_v28 = vpop.f32.mrf.mxu0 }
 0x121   :  { %v1167_v31 = vadd.f32 %v1166_v28, %v1153_v26  ;;  %v1180_v32 = vpop.f32.mrf.mxu1 }
 0x123   :  { %v1181_v35 = vadd.f32 %v1180_v32, %v1167_v31 }
 0x125   :  { %v1185_v39 = vpack.c.bf16 %v1181_v35, %v1055_v22  ;;  %v1204_v52 = vmul.f32 %v1181_v35, %v1181_v35 }
 0x127   :  { %1187 = vst [vmem:[%s2989_s2] sm:$0xff] %v1185_v39 }
 0x128   :  { %v1168_v45 = vpop.f32.mrf.mxu0 }
 0x129   :  { %v1169_v46 = vadd.f32 %v1168_v45, %v1155_v42  ;;  %v1182_v47 = vpop.f32.mrf.mxu1 }
 0x12b   :  { %v1183_v50 = vadd.f32 %v1182_v47, %v1169_v46 }
 0x12d   :  { %v1186_v8 = vpack.c.bf16 %v1183_v50, %v1057_v19  ;;  %v1196_v53 = vadd.f32 %v1183_v50, %v1181_v35  ;;  %v1206_v54 = vmul.f32 %v1183_v50, %v1183_v50 }
 0x12f   :  { %1188 = vst [vmem:[%s2989_s2 + $0x8] sm:$0xff] %v1186_v8  ;;  %v1197_v2 = vrot.slane %v1196_v53, 4  ;;  %v1214_v25 = vadd.f32 %v1206_v54, %v1204_v52 }
 0x131   :  { %v1198_v56 = vadd.f32 %v1197_v2, %v1196_v53  ;;  %v1215_v60 = vrot.slane %v1214_v25, 4 }
 0x133   :  { %v1199_v58 = vrot.slane %v1198_v56, 2  ;;  %v1216_v59 = vadd.f32 %v1215_v60, %v1214_v25 }
 0x135   :  { %v1200_v62 = vadd.f32 %v1199_v58, %v1198_v56  ;;  %v1217_v63 = vrot.slane %v1216_v59, 2 }
 0x137   :  { %v1201_v1 = vrot.slane %v1200_v62, 1  ;;  %v1218_v3 = vadd.f32 %v1217_v63, %v1216_v59 }
 0x139   :  { %v1219_v5 = vrot.slane %v1218_v3, 1  ;;  %v1202_v6 = vadd.f32 %v1201_v1, %v1200_v62 }
 0x13b   :  { %v1220_v36 = vadd.f32 %v1219_v5, %v1218_v3 }
 0x13d   :  { %v1223_v40 = vsel %vm1221_vm0, %v1202_v6, %v1220_v36 }
 0x13e   :  { %v1226_v7 = vrot.slane %v1223_v40, 6 }
 0x140   :  { %v1228_v10 = vsel %vm1227_vm1, %v1222_v9, %v1226_v7 }
 0x141   :  { %1230 = vst [vmem:[%s2990_s3] sm:$0xf] %v1228_v10 }

// kernel: conv_bn_swish.3
= control target key start
LH: loop header
LB: loop body
LE: loop exit
PB: predicated region body
PF: predicated region fallthrough
CT: control target
= control target key end

     0   :  { %s110_s0 = inlined_call_operand.vmem [shape: bf16[16,256], index: 0, kind: input, shape index: {}, may-alias: {0,3}]   ;;  %s111_s1 = inlined_call_operand.vmem [shape: f32[1,256], index: 1, kind: input, shape index: {}]   ;;  %s112_s2 = inlined_call_operand.vmem [shape: f32[1,256], index: 2, kind: input, shape index: {}]   ;;  %s113_s3 = inlined_call_operand.vmem [shape: bf16[16,256], index: 3, kind: output, shape index: {}, may-alias: {0,3}]  }
   0x1   :  { %v14_v0 = vld [vmem:[%s110_s0] sm:$0xff]  ;;  %v15_v7 = vld [vmem:[%s110_s0 + $0x8] sm:$0xff] }
   0x2   :  { %v20_v1 = vld [vmem:[%s111_s1] sm:$0x3]  ;;  %v16_v3 = vunpack.c.l.bf16 %v14_v0  ;;  %v17_v4 = vunpack.c.h.bf16 %v14_v0  ;;  %v18_v10 = vunpack.c.l.bf16 %v15_v7  ;;  %v19_v11 = vunpack.c.h.bf16 %v15_v7 }
   0x3   :  { %v30_v2 = vld [vmem:[%s112_s2] sm:$0x3]  ;;  %v22_v5 = vperm.slane %v20_v1, 0  ;;  %v23_v6 = vperm.slane %v20_v1, 1 }
   0x4   :  { %v32_v8 = vperm.slane %v30_v2, 0  ;;  %v33_v9 = vperm.slane %v30_v2, 1 }
   0x5   :  { %v26_v12 = vmul.f32 %v22_v5, %v16_v3  ;;  %v27_v13 = vmul.f32 %v23_v6, %v17_v4  ;;  %v28_v14 = vmul.f32 %v22_v5, %v18_v10  ;;  %v29_v15 = vmul.f32 %v23_v6, %v19_v11 }
   0x7   :  { %v36_v16 = vadd.f32 %v32_v8, %v26_v12  ;;  %v37_v17 = vadd.f32 %v33_v9, %v27_v13  ;;  %v38_v18 = vadd.f32 %v32_v8, %v28_v14  ;;  %v39_v19 = vadd.f32 %v33_v9, %v29_v15 }
   0x9   :  { %v40_v20 = vmul.f32 0.5, %v36_v16  ;;  %v41_v21 = vmul.f32 0.5, %v37_v17  ;;  %v42_v22 = vmul.f32 0.5, %v38_v18  ;;  %v43_v23 = vmul.f32 0.5, %v39_v19 }
   0xb   :  { %64 = vtanh.f32 %v40_v20 }
   0xc   :  { %66 = vtanh.f32 %v41_v21 }
   0xd   :  { %68 = vtanh.f32 %v42_v22 }
   0xe   :  { %70 = vtanh.f32 %v43_v23 }
  0x11   :  { %v65_v24 = vpop.eup %64 }
  0x12   :  { %v67_v25 = vpop.eup %66  ;;  %v48_v26 = vadd.f32 1.0, %v65_v24 }
  0x13   :  { %v69_v27 = vpop.eup %68  ;;  %v49_v28 = vadd.f32 1.0, %v67_v25 }
  0x14   :  { %v71_v29 = vpop.eup %70  ;;  %v52_v30 = vmul.f32 %v48_v26, %v40_v20  ;;  %v50_v31 = vadd.f32 1.0, %v69_v27 }
  0x15   :  { %v53_v32 = vmul.f32 %v49_v28, %v41_v21  ;;  %v51_v33 = vadd.f32 1.0, %v71_v29 }
  0x16   :  { %v54_v34 = vmul.f32 %v50_v31, %v42_v22 }
  0x17   :  { %v56_v35 = vpack.c.bf16 %v53_v32, %v52_v30  ;;  %v55_v36 = vmul.f32 %v51_v33, %v43_v23 }
  0x19   :  { %58 = vst [vmem:[%s113_s3] sm:$0xff] %v56_v35  ;;  %v57_v37 = vpack.c.bf16 %v55_v36, %v54_v34 }
  0x1b   :  { %59 = vst [vmem:[%s113_s3 + $0x8] sm:$0xff] %v57_v37 }

</bundles_post_ra>
